<compile_context>
chip_gen: v5e
topology: v5e:2x2
jax: 0.10.0
libtpu: 0.0.40
codegen_flags: <defaults>
</compile_context>

<pallas_src>
import math

import jax
import jax.numpy as jnp
from jax import lax
from jax.experimental import pallas as pl
from jax.experimental.pallas import tpu as pltpu

# ---- problem sizes (small, consistent with the module defaults) -------------
E = 16          # embed_dim
H = 32          # hidden_dim
T = 5           # time_length (default 5)
K = 10          # topic_num   (default 10)
B = 8           # number of snapshot readouts
NHEAD = 4
HEAD = H // NHEAD
FF = 2 * H
NEG_SLOPE = 0.01            # nn.LeakyReLU default
LN_EPS = 1e-5               # nn.LayerNorm default
LOG_UNIF = math.log(1.0 / K)   # log-uniform prior over topics


# ---- small in-kernel helpers -------------------------------------------------
def _leaky_relu(x):
    return jnp.where(x > 0, x, NEG_SLOPE * x)


def _layer_norm(x, w, b):
    mu = jnp.mean(x, axis=-1, keepdims=True)
    var = jnp.mean((x - mu) ** 2, axis=-1, keepdims=True)
    return (x - mu) * lax.rsqrt(var + LN_EPS) * w + b


def _softmax_last(x):
    m = jnp.max(x, axis=-1, keepdims=True)
    e = jnp.exp(x - m)
    return e * pl.reciprocal(jnp.sum(e, axis=-1, keepdims=True), approx=True)


def _dot(a, b):
    return jnp.dot(a, b, preferred_element_type=jnp.float32)


def _dot_nt(a, b):
    # contract the last dim of both operands: (M, D) x (N, D) -> (M, N)
    return lax.dot_general(a, b, (((1,), (1,)), ((), ())),
                           preferred_element_type=jnp.float32)


def _tree_sum(terms):
    # balanced-tree add to keep the dependency chain short
    while len(terms) > 1:
        nxt = [terms[i] + terms[i + 1] for i in range(0, len(terms) - 1, 2)]
        if len(terms) % 2:
            nxt.append(terms[-1])
        terms = nxt
    return terms[0]


# =============================================================================
# Fused kernel: time path + snapshot path + topic loss (single invocation)
# =============================================================================
def fused_topic_kernel(tx_ref, wm_ref, bm_ref,
                       wq_ref, wk_ref, wv_ref, bq_ref, bk_ref, bv_ref,
                       wo_ref, bo_ref, ln1w_ref, ln1b_ref,
                       w1_ref, b1_ref, w2_ref, b2_ref, ln2w_ref, ln2b_ref,
                       wproj_ref,
                       x_ref, wenc_ref, benc_ref, wtw_ref, wfc_ref, bfc_ref,
                       out_ref, emb_ref, loss_ref,
                       attn_scr, xflat_scr, tt_scr):
    # ---------------- time path ----------------
    # time MLP: (T, E) -> (T, H), LeakyReLU
    x = _leaky_relu(_dot(tx_ref[...], wm_ref[...]) + bm_ref[...])

    # multi-head self attention (4 heads, post-norm encoder layer, eval mode)
    q = _dot(x, wq_ref[...]) + bq_ref[...]
    k = _dot(x, wk_ref[...]) + bk_ref[...]
    v = _dot(x, wv_ref[...]) + bv_ref[...]
    scale = 1.0 / float(HEAD) ** 0.5
    for h in range(NHEAD):                      # static unrolled, 4 heads
        qh = q[:, h * HEAD:(h + 1) * HEAD]
        kh = k[:, h * HEAD:(h + 1) * HEAD]
        vh = v[:, h * HEAD:(h + 1) * HEAD]
        p = _softmax_last(_dot_nt(qh, kh) * scale)            # (T, T)
        attn_scr[:, h * HEAD:(h + 1) * HEAD] = _dot(p, vh)    # (T, HEAD)
    # single output projection: concat(heads) @ Wo + bo
    attn = _dot(attn_scr[...], wo_ref[...]) + bo_ref[...]

    x = _layer_norm(x + attn, ln1w_ref[...], ln1b_ref[...])

    # feed forward (ReLU, dim_feedforward = 2*H)
    ff = jnp.maximum(_dot(x, w1_ref[...]) + b1_ref[...], 0.0)
    ff = _dot(ff, w2_ref[...]) + b2_ref[...]
    x = _layer_norm(x + ff, ln2w_ref[...], ln2b_ref[...])      # (T, H)

    # flatten (T, H) -> (1, T*H) in VMEM, then ONE projector matmul
    for t in range(T):                          # static unrolled, 5 rows
        xflat_scr[:, t * H:(t + 1) * H] = x[t:t + 1, :]
    flat = _leaky_relu(_dot(xflat_scr[...], wproj_ref[...]))   # (1, K*H)

    # in-VMEM "view(K, H)" of the flat time topics (no HBM / XLA reshape)
    for kk in range(K):                         # static unrolled, 10 rows
        tt_scr[kk:kk + 1, :] = flat[:, kk * H:(kk + 1) * H]
    tt = tt_scr[...]                                            # (K, H)

    # ---------------- snapshot path ----------------
    bsz = x_ref.shape[0]
    hs = _leaky_relu(_dot(x_ref[...], wenc_ref[...]) + benc_ref[...])   # (B, H)

    topic_a = _dot_nt(hs, tt)                                   # (B, K)
    m = jnp.max(topic_a, axis=-1, keepdims=True)
    e = jnp.exp(topic_a - m)
    se = jnp.sum(e, axis=-1, keepdims=True)
    a = e * pl.reciprocal(se, approx=True)                      # softmax (B, K)
    logp = topic_a - (m + jnp.log(se))                          # log_softmax

    # weighted per-topic transforms: slice the weight ref, not the activation
    terms = [_dot(hs, wtw_ref[kk]) * a[:, kk:kk + 1] for kk in range(K)]
    emb = _tree_sum(terms)                                      # (B, H)
    emb_ref[...] = emb

    out_ref[...] = _leaky_relu(_dot(emb, wfc_ref[...]) + bfc_ref[...])   # (B, 1)

    # ---------------- topic loss ----------------
    # SimLoss ~ cosine-similarity of time topics, diagonal removed, abs-mean
    nrm = jnp.sqrt(jnp.sum(tt * tt, axis=-1, keepdims=True))
    tn = tt * pl.reciprocal(jnp.maximum(nrm, 1e-8), approx=False)
    sim = _dot_nt(tn, tn)                                       # (K, K)
    diag = (lax.broadcasted_iota(jnp.int32, (K, K), 0) ==
            lax.broadcasted_iota(jnp.int32, (K, K), 1))
    sim = jnp.where(diag, 0.0, sim)
    sim_loss = jnp.mean(jnp.abs(sim))

    # KLDivLoss(log_target=True, reduction='batchmean') with uniform target:
    # exp(log(1/K)) folded to the constant 1/K.
    kl = (1.0 / K) * jnp.sum(LOG_UNIF - logp) / float(bsz)

    loss_ref[...] = jnp.broadcast_to(sim_loss + kl, (1, 1))


# =============================================================================
# Wrapper
# =============================================================================
def _vmem_spec():
    return pl.BlockSpec(memory_space=pltpu.MemorySpace.VMEM)


@jax.jit
def topic_disen_forward(snapshot_readouts, time_x, params):
    p = params
    out, topic_embs, topic_loss = pl.pallas_call(
        fused_topic_kernel,
        out_shape=(jax.ShapeDtypeStruct((B, 1), jnp.float32),
                   jax.ShapeDtypeStruct((B, H), jnp.float32),
                   jax.ShapeDtypeStruct((1, 1), jnp.float32)),
        in_specs=[_vmem_spec()] * 26,
        out_specs=(_vmem_spec(), _vmem_spec(), _vmem_spec()),
        scratch_shapes=[pltpu.VMEM((T, H), jnp.float32),      # attn head concat
                        pltpu.VMEM((1, T * H), jnp.float32),  # flattened x
                        pltpu.VMEM((K, H), jnp.float32)],     # time topics
    )(time_x,
      p['w_time_mlp'], p['b_time_mlp'],
      p['wq'], p['wk'], p['wv'], p['bq'], p['bk'], p['bv'],
      p['wo'], p['bo'], p['ln1_w'], p['ln1_b'],
      p['w_ff1'], p['b_ff1'], p['w_ff2'], p['b_ff2'], p['ln2_w'], p['ln2_b'],
      p['w_proj'],
      snapshot_readouts, p['w_enc'], p['b_enc'],
      p['w_topic_w'], p['w_fc'], p['b_fc'])
    return out, topic_embs, topic_loss[0, 0]


def init_params(key):
    ks = jax.random.split(key, 20)
    n = lambda k, s, sc=0.1: sc * jax.random.normal(k, s, dtype=jnp.float32)
    params = {
        # topic_encoder: MLP(H, H)
        'w_enc': n(ks[0], (H, H)), 'b_enc': n(ks[1], (1, H)),
        # fc_out: MLP(H, 1)
        'w_fc': n(ks[2], (H, 1)), 'b_fc': n(ks[3], (1, 1)),
        # time_encoder[0]: MLP(E, H)
        'w_time_mlp': n(ks[4], (E, H)), 'b_time_mlp': n(ks[5], (1, H)),
        # TransformerEncoderLayer self-attention (in_proj split into q/k/v)
        'wq': n(ks[6], (H, H)), 'wk': n(ks[7], (H, H)), 'wv': n(ks[8], (H, H)),
        'bq': n(ks[9], (1, H)), 'bk': n(ks[10], (1, H)), 'bv': n(ks[11], (1, H)),
        'wo': n(ks[12], (H, H)), 'bo': n(ks[13], (1, H)),
        'ln1_w': jnp.ones((1, H), jnp.float32), 'ln1_b': jnp.zeros((1, H), jnp.float32),
        # feed-forward H -> 2H -> H
        'w_ff1': n(ks[14], (H, FF)), 'b_ff1': n(ks[15], (1, FF)),
        'w_ff2': n(ks[16], (FF, H)), 'b_ff2': n(ks[17], (1, H)),
        'ln2_w': jnp.ones((1, H), jnp.float32), 'ln2_b': jnp.zeros((1, H), jnp.float32),
        # time_topic_projector: MLP(T*H, K*H, bias=False), stored (in, out)
        'w_proj': n(ks[18], (T * H, K * H)),
        # topic_w: Linear(H, K*H, bias=False), stored per-topic as (K, H, H)
        'w_topic_w': n(ks[19], (K, H, H)),
    }
    return params


if __name__ == "__main__":
    key = jax.random.PRNGKey(0)
    k_par, k_snap, k_time = jax.random.split(key, 3)

    params = init_params(k_par)
    snapshot_readouts = jax.random.normal(k_snap, (B, H), dtype=jnp.float32)
    num_phases = 3
    time_embs = jax.random.normal(k_time, (num_phases, T, E), dtype=jnp.float32)
    phase = 0                                    # glue: time_embs[phase]

    out, topic_embs, topic_loss = topic_disen_forward(
        snapshot_readouts, time_embs[phase], params)
    jax.block_until_ready((out, topic_embs, topic_loss))

    assert out.shape == (B, 1)
    assert topic_embs.shape == (B, H)
    assert topic_loss.shape == ()
    assert bool(jnp.all(jnp.isfinite(out)))
    assert bool(jnp.all(jnp.isfinite(topic_embs)))
    assert bool(jnp.isfinite(topic_loss))
    print("KERNEL_OK")
</pallas_src>

<mosaic_0001>
module attributes {stable_mosaic.version = 11 : i64} {
  func.func @fused_topic_kernel(%arg0: memref<5x16xf32, #tpu.memory_space<vmem>>, %arg1: memref<16x32xf32, #tpu.memory_space<vmem>>, %arg2: memref<1x32xf32, #tpu.memory_space<vmem>>, %arg3: memref<32x32xf32, #tpu.memory_space<vmem>>, %arg4: memref<32x32xf32, #tpu.memory_space<vmem>>, %arg5: memref<32x32xf32, #tpu.memory_space<vmem>>, %arg6: memref<1x32xf32, #tpu.memory_space<vmem>>, %arg7: memref<1x32xf32, #tpu.memory_space<vmem>>, %arg8: memref<1x32xf32, #tpu.memory_space<vmem>>, %arg9: memref<32x32xf32, #tpu.memory_space<vmem>>, %arg10: memref<1x32xf32, #tpu.memory_space<vmem>>, %arg11: memref<1x32xf32, #tpu.memory_space<vmem>>, %arg12: memref<1x32xf32, #tpu.memory_space<vmem>>, %arg13: memref<32x64xf32, #tpu.memory_space<vmem>>, %arg14: memref<1x64xf32, #tpu.memory_space<vmem>>, %arg15: memref<64x32xf32, #tpu.memory_space<vmem>>, %arg16: memref<1x32xf32, #tpu.memory_space<vmem>>, %arg17: memref<1x32xf32, #tpu.memory_space<vmem>>, %arg18: memref<1x32xf32, #tpu.memory_space<vmem>>, %arg19: memref<160x320xf32, #tpu.memory_space<vmem>>, %arg20: memref<8x32xf32, #tpu.memory_space<vmem>>, %arg21: memref<32x32xf32, #tpu.memory_space<vmem>>, %arg22: memref<1x32xf32, #tpu.memory_space<vmem>>, %arg23: memref<10x32x32xf32, #tpu.memory_space<vmem>>, %arg24: memref<32x1xf32, #tpu.memory_space<vmem>>, %arg25: memref<1x1xf32, #tpu.memory_space<vmem>>, %arg26: memref<8x1xf32, #tpu.memory_space<vmem>>, %arg27: memref<8x32xf32, #tpu.memory_space<vmem>>, %arg28: memref<1x1xf32, #tpu.memory_space<vmem>>, %arg29: memref<5x32xf32, #tpu.memory_space<vmem>>, %arg30: memref<1x160xf32, #tpu.memory_space<vmem>>, %arg31: memref<10x32xf32, #tpu.memory_space<vmem>>) attributes {dimension_semantics = [], scalar_prefetch = 0 : i64, scratch_operands = 3 : i64, tpu.core_type = #tpu.core_type<tc>} {
    %c0 = arith.constant 0 : index
    %c0_0 = arith.constant 0 : index
    %0 = vector.load %arg0[%c0, %c0_0] : memref<5x16xf32, #tpu.memory_space<vmem>>, vector<5x16xf32>
    %c0_1 = arith.constant 0 : index
    %c0_2 = arith.constant 0 : index
    %1 = vector.load %arg1[%c0_1, %c0_2] : memref<16x32xf32, #tpu.memory_space<vmem>>, vector<16x32xf32>
    %cst = arith.constant dense<0.000000e+00> : vector<5x32xf32>
    %2 = tpu.matmul %0, %1, %cst {dimension_numbers = #tpu.dot_dimension_numbers<[1], [0], [0], [1], [0, 0, 1, 1], [], []>} : vector<5x16xf32>, vector<16x32xf32>, vector<5x32xf32> -> vector<5x32xf32>
    %c0_3 = arith.constant 0 : index
    %c0_4 = arith.constant 0 : index
    %3 = vector.load %arg2[%c0_3, %c0_4] : memref<1x32xf32, #tpu.memory_space<vmem>>, vector<1x32xf32>
    %4 = vector.broadcast %3 : vector<1x32xf32> to vector<5x32xf32>
    %5 = arith.addf %2, %4 : vector<5x32xf32>
    %cst_5 = arith.constant 0.000000e+00 : f32
    %6 = vector.broadcast %cst_5 : f32 to vector<5x32xf32>
    %7 = arith.cmpf ogt, %5, %6 : vector<5x32xf32>
    %cst_6 = arith.constant 0.00999999977 : f32
    %8 = vector.broadcast %cst_6 : f32 to vector<5x32xf32>
    %9 = arith.mulf %8, %5 : vector<5x32xf32>
    %10 = arith.select %7, %5, %9 : vector<5x32xi1>, vector<5x32xf32>
    %c0_7 = arith.constant 0 : index
    %c0_8 = arith.constant 0 : index
    %11 = vector.load %arg3[%c0_7, %c0_8] : memref<32x32xf32, #tpu.memory_space<vmem>>, vector<32x32xf32>
    %cst_9 = arith.constant dense<0.000000e+00> : vector<5x32xf32>
    %12 = tpu.matmul %10, %11, %cst_9 {dimension_numbers = #tpu.dot_dimension_numbers<[1], [0], [0], [1], [0, 0, 1, 1], [], []>} : vector<5x32xf32>, vector<32x32xf32>, vector<5x32xf32> -> vector<5x32xf32>
    %c0_10 = arith.constant 0 : index
    %c0_11 = arith.constant 0 : index
    %13 = vector.load %arg6[%c0_10, %c0_11] : memref<1x32xf32, #tpu.memory_space<vmem>>, vector<1x32xf32>
    %14 = vector.broadcast %13 : vector<1x32xf32> to vector<5x32xf32>
    %15 = arith.addf %12, %14 : vector<5x32xf32>
    %c0_12 = arith.constant 0 : index
    %c0_13 = arith.constant 0 : index
    %16 = vector.load %arg4[%c0_12, %c0_13] : memref<32x32xf32, #tpu.memory_space<vmem>>, vector<32x32xf32>
    %cst_14 = arith.constant dense<0.000000e+00> : vector<5x32xf32>
    %17 = tpu.matmul %10, %16, %cst_14 {dimension_numbers = #tpu.dot_dimension_numbers<[1], [0], [0], [1], [0, 0, 1, 1], [], []>} : vector<5x32xf32>, vector<32x32xf32>, vector<5x32xf32> -> vector<5x32xf32>
    %c0_15 = arith.constant 0 : index
    %c0_16 = arith.constant 0 : index
    %18 = vector.load %arg7[%c0_15, %c0_16] : memref<1x32xf32, #tpu.memory_space<vmem>>, vector<1x32xf32>
    %19 = vector.broadcast %18 : vector<1x32xf32> to vector<5x32xf32>
    %20 = arith.addf %17, %19 : vector<5x32xf32>
    %c0_17 = arith.constant 0 : index
    %c0_18 = arith.constant 0 : index
    %21 = vector.load %arg5[%c0_17, %c0_18] : memref<32x32xf32, #tpu.memory_space<vmem>>, vector<32x32xf32>
    %cst_19 = arith.constant dense<0.000000e+00> : vector<5x32xf32>
    %22 = tpu.matmul %10, %21, %cst_19 {dimension_numbers = #tpu.dot_dimension_numbers<[1], [0], [0], [1], [0, 0, 1, 1], [], []>} : vector<5x32xf32>, vector<32x32xf32>, vector<5x32xf32> -> vector<5x32xf32>
    %c0_20 = arith.constant 0 : index
    %c0_21 = arith.constant 0 : index
    %23 = vector.load %arg8[%c0_20, %c0_21] : memref<1x32xf32, #tpu.memory_space<vmem>>, vector<1x32xf32>
    %24 = vector.broadcast %23 : vector<1x32xf32> to vector<5x32xf32>
    %25 = arith.addf %22, %24 : vector<5x32xf32>
    %26 = vector.extract_strided_slice %15 {offsets = [0, 0], sizes = [5, 8], strides = [1, 1]} : vector<5x32xf32> to vector<5x8xf32>
    %27 = vector.extract_strided_slice %20 {offsets = [0, 0], sizes = [5, 8], strides = [1, 1]} : vector<5x32xf32> to vector<5x8xf32>
    %28 = vector.extract_strided_slice %25 {offsets = [0, 0], sizes = [5, 8], strides = [1, 1]} : vector<5x32xf32> to vector<5x8xf32>
    %cst_22 = arith.constant dense<0.000000e+00> : vector<5x5xf32>
    %29 = tpu.matmul %26, %27, %cst_22 {dimension_numbers = #tpu.dot_dimension_numbers<[1], [1], [0], [0], [0, 0, 1, 0], [], []>} : vector<5x8xf32>, vector<5x8xf32>, vector<5x5xf32> -> vector<5x5xf32>
    %cst_23 = arith.constant 0.353553385 : f32
    %30 = vector.broadcast %cst_23 : f32 to vector<5x5xf32>
    %31 = arith.mulf %29, %30 : vector<5x5xf32>
    %cst_24 = arith.constant dense<0xFF800000> : vector<5xf32>
    %32 = vector.multi_reduction <maximumf>, %31, %cst_24 [1] : vector<5x5xf32> to vector<5xf32>
    %33 = vector.shape_cast %32 : vector<5xf32> to vector<5x1xf32>
    %34 = vector.broadcast %33 : vector<5x1xf32> to vector<5x5xf32>
    %35 = arith.subf %31, %34 : vector<5x5xf32>
    %36 = math.exp %35 : vector<5x5xf32>
    %cst_25 = arith.constant dense<0.000000e+00> : vector<5xf32>
    %37 = vector.multi_reduction <add>, %36, %cst_25 [1] : vector<5x5xf32> to vector<5xf32>
    %38 = vector.shape_cast %37 : vector<5xf32> to vector<5x1xf32>
    %39 = tpu.reciprocal %38 {approx = true} : vector<5x1xf32> -> vector<5x1xf32>
    %40 = vector.broadcast %39 : vector<5x1xf32> to vector<5x5xf32>
    %41 = arith.mulf %36, %40 : vector<5x5xf32>
    %cst_26 = arith.constant dense<0.000000e+00> : vector<5x8xf32>
    %42 = tpu.matmul %41, %28, %cst_26 {dimension_numbers = #tpu.dot_dimension_numbers<[1], [0], [0], [1], [0, 0, 1, 1], [], []>} : vector<5x5xf32>, vector<5x8xf32>, vector<5x8xf32> -> vector<5x8xf32>
    %c0_27 = arith.constant 0 : index
    %c0_28 = arith.constant 0 : index
    %43 = vector.load %arg29[%c0_27, %c0_28] : memref<5x32xf32, #tpu.memory_space<vmem>>, vector<5x8xf32>
    tpu.vector_store %arg29[%c0_27, %c0_28], %42 {strides = array<i32>} : memref<5x32xf32, #tpu.memory_space<vmem>>, vector<5x8xf32>,
    %44 = vector.extract_strided_slice %15 {offsets = [0, 8], sizes = [5, 8], strides = [1, 1]} : vector<5x32xf32> to vector<5x8xf32>
    %45 = vector.extract_strided_slice %20 {offsets = [0, 8], sizes = [5, 8], strides = [1, 1]} : vector<5x32xf32> to vector<5x8xf32>
    %46 = vector.extract_strided_slice %25 {offsets = [0, 8], sizes = [5, 8], strides = [1, 1]} : vector<5x32xf32> to vector<5x8xf32>
    %cst_29 = arith.constant dense<0.000000e+00> : vector<5x5xf32>
    %47 = tpu.matmul %44, %45, %cst_29 {dimension_numbers = #tpu.dot_dimension_numbers<[1], [1], [0], [0], [0, 0, 1, 0], [], []>} : vector<5x8xf32>, vector<5x8xf32>, vector<5x5xf32> -> vector<5x5xf32>
    %cst_30 = arith.constant 0.353553385 : f32
    %48 = vector.broadcast %cst_30 : f32 to vector<5x5xf32>
    %49 = arith.mulf %47, %48 : vector<5x5xf32>
    %cst_31 = arith.constant dense<0xFF800000> : vector<5xf32>
    %50 = vector.multi_reduction <maximumf>, %49, %cst_31 [1] : vector<5x5xf32> to vector<5xf32>
    %51 = vector.shape_cast %50 : vector<5xf32> to vector<5x1xf32>
    %52 = vector.broadcast %51 : vector<5x1xf32> to vector<5x5xf32>
    %53 = arith.subf %49, %52 : vector<5x5xf32>
    %54 = math.exp %53 : vector<5x5xf32>
    %cst_32 = arith.constant dense<0.000000e+00> : vector<5xf32>
    %55 = vector.multi_reduction <add>, %54, %cst_32 [1] : vector<5x5xf32> to vector<5xf32>
    %56 = vector.shape_cast %55 : vector<5xf32> to vector<5x1xf32>
    %57 = tpu.reciprocal %56 {approx = true} : vector<5x1xf32> -> vector<5x1xf32>
    %58 = vector.broadcast %57 : vector<5x1xf32> to vector<5x5xf32>
    %59 = arith.mulf %54, %58 : vector<5x5xf32>
    %cst_33 = arith.constant dense<0.000000e+00> : vector<5x8xf32>
    %60 = tpu.matmul %59, %46, %cst_33 {dimension_numbers = #tpu.dot_dimension_numbers<[1], [0], [0], [1], [0, 0, 1, 1], [], []>} : vector<5x5xf32>, vector<5x8xf32>, vector<5x8xf32> -> vector<5x8xf32>
    %c0_34 = arith.constant 0 : index
    %c8 = arith.constant 8 : index
    %61 = vector.load %arg29[%c0_34, %c8] : memref<5x32xf32, #tpu.memory_space<vmem>>, vector<5x8xf32>
    tpu.vector_store %arg29[%c0_34, %c8], %60 {strides = array<i32>} : memref<5x32xf32, #tpu.memory_space<vmem>>, vector<5x8xf32>,
    %62 = vector.extract_strided_slice %15 {offsets = [0, 16], sizes = [5, 8], strides = [1, 1]} : vector<5x32xf32> to vector<5x8xf32>
    %63 = vector.extract_strided_slice %20 {offsets = [0, 16], sizes = [5, 8], strides = [1, 1]} : vector<5x32xf32> to vector<5x8xf32>
    %64 = vector.extract_strided_slice %25 {offsets = [0, 16], sizes = [5, 8], strides = [1, 1]} : vector<5x32xf32> to vector<5x8xf32>
    %cst_35 = arith.constant dense<0.000000e+00> : vector<5x5xf32>
    %65 = tpu.matmul %62, %63, %cst_35 {dimension_numbers = #tpu.dot_dimension_numbers<[1], [1], [0], [0], [0, 0, 1, 0], [], []>} : vector<5x8xf32>, vector<5x8xf32>, vector<5x5xf32> -> vector<5x5xf32>
    %cst_36 = arith.constant 0.353553385 : f32
    %66 = vector.broadcast %cst_36 : f32 to vector<5x5xf32>
    %67 = arith.mulf %65, %66 : vector<5x5xf32>
    %cst_37 = arith.constant dense<0xFF800000> : vector<5xf32>
    %68 = vector.multi_reduction <maximumf>, %67, %cst_37 [1] : vector<5x5xf32> to vector<5xf32>
    %69 = vector.shape_cast %68 : vector<5xf32> to vector<5x1xf32>
    %70 = vector.broadcast %69 : vector<5x1xf32> to vector<5x5xf32>
    %71 = arith.subf %67, %70 : vector<5x5xf32>
    %72 = math.exp %71 : vector<5x5xf32>
    %cst_38 = arith.constant dense<0.000000e+00> : vector<5xf32>
    %73 = vector.multi_reduction <add>, %72, %cst_38 [1] : vector<5x5xf32> to vector<5xf32>
    %74 = vector.shape_cast %73 : vector<5xf32> to vector<5x1xf32>
    %75 = tpu.reciprocal %74 {approx = true} : vector<5x1xf32> -> vector<5x1xf32>
    %76 = vector.broadcast %75 : vector<5x1xf32> to vector<5x5xf32>
    %77 = arith.mulf %72, %76 : vector<5x5xf32>
    %cst_39 = arith.constant dense<0.000000e+00> : vector<5x8xf32>
    %78 = tpu.matmul %77, %64, %cst_39 {dimension_numbers = #tpu.dot_dimension_numbers<[1], [0], [0], [1], [0, 0, 1, 1], [], []>} : vector<5x5xf32>, vector<5x8xf32>, vector<5x8xf32> -> vector<5x8xf32>
    %c0_40 = arith.constant 0 : index
    %c16 = arith.constant 16 : index
    %79 = vector.load %arg29[%c0_40, %c16] : memref<5x32xf32, #tpu.memory_space<vmem>>, vector<5x8xf32>
    tpu.vector_store %arg29[%c0_40, %c16], %78 {strides = array<i32>} : memref<5x32xf32, #tpu.memory_space<vmem>>, vector<5x8xf32>,
    %80 = vector.extract_strided_slice %15 {offsets = [0, 24], sizes = [5, 8], strides = [1, 1]} : vector<5x32xf32> to vector<5x8xf32>
    %81 = vector.extract_strided_slice %20 {offsets = [0, 24], sizes = [5, 8], strides = [1, 1]} : vector<5x32xf32> to vector<5x8xf32>
    %82 = vector.extract_strided_slice %25 {offsets = [0, 24], sizes = [5, 8], strides = [1, 1]} : vector<5x32xf32> to vector<5x8xf32>
    %cst_41 = arith.constant dense<0.000000e+00> : vector<5x5xf32>
    %83 = tpu.matmul %80, %81, %cst_41 {dimension_numbers = #tpu.dot_dimension_numbers<[1], [1], [0], [0], [0, 0, 1, 0], [], []>} : vector<5x8xf32>, vector<5x8xf32>, vector<5x5xf32> -> vector<5x5xf32>
    %cst_42 = arith.constant 0.353553385 : f32
    %84 = vector.broadcast %cst_42 : f32 to vector<5x5xf32>
    %85 = arith.mulf %83, %84 : vector<5x5xf32>
    %cst_43 = arith.constant dense<0xFF800000> : vector<5xf32>
    %86 = vector.multi_reduction <maximumf>, %85, %cst_43 [1] : vector<5x5xf32> to vector<5xf32>
    %87 = vector.shape_cast %86 : vector<5xf32> to vector<5x1xf32>
    %88 = vector.broadcast %87 : vector<5x1xf32> to vector<5x5xf32>
    %89 = arith.subf %85, %88 : vector<5x5xf32>
    %90 = math.exp %89 : vector<5x5xf32>
    %cst_44 = arith.constant dense<0.000000e+00> : vector<5xf32>
    %91 = vector.multi_reduction <add>, %90, %cst_44 [1] : vector<5x5xf32> to vector<5xf32>
    %92 = vector.shape_cast %91 : vector<5xf32> to vector<5x1xf32>
    %93 = tpu.reciprocal %92 {approx = true} : vector<5x1xf32> -> vector<5x1xf32>
    %94 = vector.broadcast %93 : vector<5x1xf32> to vector<5x5xf32>
    %95 = arith.mulf %90, %94 : vector<5x5xf32>
    %cst_45 = arith.constant dense<0.000000e+00> : vector<5x8xf32>
    %96 = tpu.matmul %95, %82, %cst_45 {dimension_numbers = #tpu.dot_dimension_numbers<[1], [0], [0], [1], [0, 0, 1, 1], [], []>} : vector<5x5xf32>, vector<5x8xf32>, vector<5x8xf32> -> vector<5x8xf32>
    %c0_46 = arith.constant 0 : index
    %c24 = arith.constant 24 : index
    %97 = vector.load %arg29[%c0_46, %c24] : memref<5x32xf32, #tpu.memory_space<vmem>>, vector<5x8xf32>
    tpu.vector_store %arg29[%c0_46, %c24], %96 {strides = array<i32>} : memref<5x32xf32, #tpu.memory_space<vmem>>, vector<5x8xf32>,
    %c0_47 = arith.constant 0 : index
    %c0_48 = arith.constant 0 : index
    %98 = vector.load %arg29[%c0_47, %c0_48] : memref<5x32xf32, #tpu.memory_space<vmem>>, vector<5x32xf32>
    %c0_49 = arith.constant 0 : index
    %c0_50 = arith.constant 0 : index
    %99 = vector.load %arg9[%c0_49, %c0_50] : memref<32x32xf32, #tpu.memory_space<vmem>>, vector<32x32xf32>
    %cst_51 = arith.constant dense<0.000000e+00> : vector<5x32xf32>
    %100 = tpu.matmul %98, %99, %cst_51 {dimension_numbers = #tpu.dot_dimension_numbers<[1], [0], [0], [1], [0, 0, 1, 1], [], []>} : vector<5x32xf32>, vector<32x32xf32>, vector<5x32xf32> -> vector<5x32xf32>
    %c0_52 = arith.constant 0 : index
    %c0_53 = arith.constant 0 : index
    %101 = vector.load %arg10[%c0_52, %c0_53] : memref<1x32xf32, #tpu.memory_space<vmem>>, vector<1x32xf32>
    %102 = vector.broadcast %101 : vector<1x32xf32> to vector<5x32xf32>
    %103 = arith.addf %100, %102 : vector<5x32xf32>
    %104 = arith.addf %10, %103 : vector<5x32xf32>
    %c0_54 = arith.constant 0 : index
    %c0_55 = arith.constant 0 : index
    %105 = vector.load %arg11[%c0_54, %c0_55] : memref<1x32xf32, #tpu.memory_space<vmem>>, vector<1x32xf32>
    %c0_56 = arith.constant 0 : index
    %c0_57 = arith.constant 0 : index
    %106 = vector.load %arg12[%c0_56, %c0_57] : memref<1x32xf32, #tpu.memory_space<vmem>>, vector<1x32xf32>
    %cst_58 = arith.constant dense<0.000000e+00> : vector<5xf32>
    %107 = vector.multi_reduction <add>, %104, %cst_58 [1] : vector<5x32xf32> to vector<5xf32>
    %108 = vector.shape_cast %107 : vector<5xf32> to vector<5x1xf32>
    %cst_59 = arith.constant 3.200000e+01 : f32
    %109 = vector.broadcast %cst_59 : f32 to vector<5x1xf32>
    %110 = arith.divf %108, %109 : vector<5x1xf32>
    %111 = vector.broadcast %110 : vector<5x1xf32> to vector<5x32xf32>
    %112 = arith.subf %104, %111 : vector<5x32xf32>
    %113 = arith.mulf %112, %112 : vector<5x32xf32>
    %cst_60 = arith.constant dense<0.000000e+00> : vector<5xf32>
    %114 = vector.multi_reduction <add>, %113, %cst_60 [1] : vector<5x32xf32> to vector<5xf32>
    %115 = vector.shape_cast %114 : vector<5xf32> to vector<5x1xf32>
    %cst_61 = arith.constant 3.200000e+01 : f32
    %116 = vector.broadcast %cst_61 : f32 to vector<5x1xf32>
    %117 = arith.divf %115, %116 : vector<5x1xf32>
    %118 = vector.broadcast %110 : vector<5x1xf32> to vector<5x32xf32>
    %119 = arith.subf %104, %118 : vector<5x32xf32>
    %cst_62 = arith.constant 9.99999974E-6 : f32
    %120 = vector.broadcast %cst_62 : f32 to vector<5x1xf32>
    %121 = arith.addf %117, %120 : vector<5x1xf32>
    %122 = math.rsqrt %121 : vector<5x1xf32>
    %123 = vector.broadcast %122 : vector<5x1xf32> to vector<5x32xf32>
    %124 = arith.mulf %119, %123 : vector<5x32xf32>
    %125 = vector.broadcast %105 : vector<1x32xf32> to vector<5x32xf32>
    %126 = arith.mulf %124, %125 : vector<5x32xf32>
    %127 = vector.broadcast %106 : vector<1x32xf32> to vector<5x32xf32>
    %128 = arith.addf %126, %127 : vector<5x32xf32>
    %c0_63 = arith.constant 0 : index
    %c0_64 = arith.constant 0 : index
    %129 = vector.load %arg13[%c0_63, %c0_64] : memref<32x64xf32, #tpu.memory_space<vmem>>, vector<32x64xf32>
    %cst_65 = arith.constant dense<0.000000e+00> : vector<5x64xf32>
    %130 = tpu.matmul %128, %129, %cst_65 {dimension_numbers = #tpu.dot_dimension_numbers<[1], [0], [0], [1], [0, 0, 1, 1], [], []>} : vector<5x32xf32>, vector<32x64xf32>, vector<5x64xf32> -> vector<5x64xf32>
    %c0_66 = arith.constant 0 : index
    %c0_67 = arith.constant 0 : index
    %131 = vector.load %arg14[%c0_66, %c0_67] : memref<1x64xf32, #tpu.memory_space<vmem>>, vector<1x64xf32>
    %132 = vector.broadcast %131 : vector<1x64xf32> to vector<5x64xf32>
    %133 = arith.addf %130, %132 : vector<5x64xf32>
    %cst_68 = arith.constant 0.000000e+00 : f32
    %134 = vector.broadcast %cst_68 : f32 to vector<5x64xf32>
    %135 = arith.maximumf %133, %134 : vector<5x64xf32>
    %c0_69 = arith.constant 0 : index
    %c0_70 = arith.constant 0 : index
    %136 = vector.load %arg15[%c0_69, %c0_70] : memref<64x32xf32, #tpu.memory_space<vmem>>, vector<64x32xf32>
    %cst_71 = arith.constant dense<0.000000e+00> : vector<5x32xf32>
    %137 = tpu.matmul %135, %136, %cst_71 {dimension_numbers = #tpu.dot_dimension_numbers<[1], [0], [0], [1], [0, 0, 1, 1], [], []>} : vector<5x64xf32>, vector<64x32xf32>, vector<5x32xf32> -> vector<5x32xf32>
    %c0_72 = arith.constant 0 : index
    %c0_73 = arith.constant 0 : index
    %138 = vector.load %arg16[%c0_72, %c0_73] : memref<1x32xf32, #tpu.memory_space<vmem>>, vector<1x32xf32>
    %139 = vector.broadcast %138 : vector<1x32xf32> to vector<5x32xf32>
    %140 = arith.addf %137, %139 : vector<5x32xf32>
    %141 = arith.addf %128, %140 : vector<5x32xf32>
    %c0_74 = arith.constant 0 : index
    %c0_75 = arith.constant 0 : index
    %142 = vector.load %arg17[%c0_74, %c0_75] : memref<1x32xf32, #tpu.memory_space<vmem>>, vector<1x32xf32>
    %c0_76 = arith.constant 0 : index
    %c0_77 = arith.constant 0 : index
    %143 = vector.load %arg18[%c0_76, %c0_77] : memref<1x32xf32, #tpu.memory_space<vmem>>, vector<1x32xf32>
    %cst_78 = arith.constant dense<0.000000e+00> : vector<5xf32>
    %144 = vector.multi_reduction <add>, %141, %cst_78 [1] : vector<5x32xf32> to vector<5xf32>
    %145 = vector.shape_cast %144 : vector<5xf32> to vector<5x1xf32>
    %cst_79 = arith.constant 3.200000e+01 : f32
    %146 = vector.broadcast %cst_79 : f32 to vector<5x1xf32>
    %147 = arith.divf %145, %146 : vector<5x1xf32>
    %148 = vector.broadcast %147 : vector<5x1xf32> to vector<5x32xf32>
    %149 = arith.subf %141, %148 : vector<5x32xf32>
    %150 = arith.mulf %149, %149 : vector<5x32xf32>
    %cst_80 = arith.constant dense<0.000000e+00> : vector<5xf32>
    %151 = vector.multi_reduction <add>, %150, %cst_80 [1] : vector<5x32xf32> to vector<5xf32>
    %152 = vector.shape_cast %151 : vector<5xf32> to vector<5x1xf32>
    %cst_81 = arith.constant 3.200000e+01 : f32
    %153 = vector.broadcast %cst_81 : f32 to vector<5x1xf32>
    %154 = arith.divf %152, %153 : vector<5x1xf32>
    %155 = vector.broadcast %147 : vector<5x1xf32> to vector<5x32xf32>
    %156 = arith.subf %141, %155 : vector<5x32xf32>
    %cst_82 = arith.constant 9.99999974E-6 : f32
    %157 = vector.broadcast %cst_82 : f32 to vector<5x1xf32>
    %158 = arith.addf %154, %157 : vector<5x1xf32>
    %159 = math.rsqrt %158 : vector<5x1xf32>
    %160 = vector.broadcast %159 : vector<5x1xf32> to vector<5x32xf32>
    %161 = arith.mulf %156, %160 : vector<5x32xf32>
    %162 = vector.broadcast %142 : vector<1x32xf32> to vector<5x32xf32>
    %163 = arith.mulf %161, %162 : vector<5x32xf32>
    %164 = vector.broadcast %143 : vector<1x32xf32> to vector<5x32xf32>
    %165 = arith.addf %163, %164 : vector<5x32xf32>
    %166 = vector.extract_strided_slice %165 {offsets = [0, 0], sizes = [1, 32], strides = [1, 1]} : vector<5x32xf32> to vector<1x32xf32>
    %c0_83 = arith.constant 0 : index
    %c0_84 = arith.constant 0 : index
    %167 = vector.load %arg30[%c0_83, %c0_84] : memref<1x160xf32, #tpu.memory_space<vmem>>, vector<1x32xf32>
    tpu.vector_store %arg30[%c0_83, %c0_84], %166 {strides = array<i32>} : memref<1x160xf32, #tpu.memory_space<vmem>>, vector<1x32xf32>,
    %168 = vector.extract_strided_slice %165 {offsets = [1, 0], sizes = [1, 32], strides = [1, 1]} : vector<5x32xf32> to vector<1x32xf32>
    %c0_85 = arith.constant 0 : index
    %c32 = arith.constant 32 : index
    %169 = vector.load %arg30[%c0_85, %c32] : memref<1x160xf32, #tpu.memory_space<vmem>>, vector<1x32xf32>
    tpu.vector_store %arg30[%c0_85, %c32], %168 {strides = array<i32>} : memref<1x160xf32, #tpu.memory_space<vmem>>, vector<1x32xf32>,
    %170 = vector.extract_strided_slice %165 {offsets = [2, 0], sizes = [1, 32], strides = [1, 1]} : vector<5x32xf32> to vector<1x32xf32>
    %c0_86 = arith.constant 0 : index
    %c64 = arith.constant 64 : index
    %171 = vector.load %arg30[%c0_86, %c64] : memref<1x160xf32, #tpu.memory_space<vmem>>, vector<1x32xf32>
    tpu.vector_store %arg30[%c0_86, %c64], %170 {strides = array<i32>} : memref<1x160xf32, #tpu.memory_space<vmem>>, vector<1x32xf32>,
    %172 = vector.extract_strided_slice %165 {offsets = [3, 0], sizes = [1, 32], strides = [1, 1]} : vector<5x32xf32> to vector<1x32xf32>
    %c0_87 = arith.constant 0 : index
    %c96 = arith.constant 96 : index
    %173 = vector.load %arg30[%c0_87, %c96] : memref<1x160xf32, #tpu.memory_space<vmem>>, vector<1x32xf32>
    tpu.vector_store %arg30[%c0_87, %c96], %172 {strides = array<i32>} : memref<1x160xf32, #tpu.memory_space<vmem>>, vector<1x32xf32>,
    %174 = vector.extract_strided_slice %165 {offsets = [4, 0], sizes = [1, 32], strides = [1, 1]} : vector<5x32xf32> to vector<1x32xf32>
    %c0_88 = arith.constant 0 : index
    %c128 = arith.constant 128 : index
    %175 = vector.load %arg30[%c0_88, %c128] : memref<1x160xf32, #tpu.memory_space<vmem>>, vector<1x32xf32>
    tpu.vector_store %arg30[%c0_88, %c128], %174 {strides = array<i32>} : memref<1x160xf32, #tpu.memory_space<vmem>>, vector<1x32xf32>,
    %c0_89 = arith.constant 0 : index
    %c0_90 = arith.constant 0 : index
    %176 = vector.load %arg30[%c0_89, %c0_90] : memref<1x160xf32, #tpu.memory_space<vmem>>, vector<1x160xf32>
    %c0_91 = arith.constant 0 : index
    %c0_92 = arith.constant 0 : index
    %177 = vector.load %arg19[%c0_91, %c0_92] : memref<160x320xf32, #tpu.memory_space<vmem>>, vector<160x320xf32>
    %cst_93 = arith.constant dense<0.000000e+00> : vector<1x320xf32>
    %178 = tpu.matmul %176, %177, %cst_93 {dimension_numbers = #tpu.dot_dimension_numbers<[1], [0], [0], [1], [0, 0, 1, 1], [], []>} : vector<1x160xf32>, vector<160x320xf32>, vector<1x320xf32> -> vector<1x320xf32>
    %cst_94 = arith.constant 0.000000e+00 : f32
    %179 = vector.broadcast %cst_94 : f32 to vector<1x320xf32>
    %180 = arith.cmpf ogt, %178, %179 : vector<1x320xf32>
    %cst_95 = arith.constant 0.00999999977 : f32
    %181 = vector.broadcast %cst_95 : f32 to vector<1x320xf32>
    %182 = arith.mulf %181, %178 : vector<1x320xf32>
    %183 = arith.select %180, %178, %182 : vector<1x320xi1>, vector<1x320xf32>
    %184 = vector.extract_strided_slice %183 {offsets = [0, 0], sizes = [1, 32], strides = [1, 1]} : vector<1x320xf32> to vector<1x32xf32>
    %c0_96 = arith.constant 0 : index
    %c0_97 = arith.constant 0 : index
    %185 = vector.load %arg31[%c0_96, %c0_97] : memref<10x32xf32, #tpu.memory_space<vmem>>, vector<1x32xf32>
    tpu.vector_store %arg31[%c0_96, %c0_97], %184 {strides = array<i32>} : memref<10x32xf32, #tpu.memory_space<vmem>>, vector<1x32xf32>,
    %186 = vector.extract_strided_slice %183 {offsets = [0, 32], sizes = [1, 32], strides = [1, 1]} : vector<1x320xf32> to vector<1x32xf32>
    %c1 = arith.constant 1 : index
    %c0_98 = arith.constant 0 : index
    %187 = vector.load %arg31[%c1, %c0_98] : memref<10x32xf32, #tpu.memory_space<vmem>>, vector<1x32xf32>
    tpu.vector_store %arg31[%c1, %c0_98], %186 {strides = array<i32>} : memref<10x32xf32, #tpu.memory_space<vmem>>, vector<1x32xf32>,
    %188 = vector.extract_strided_slice %183 {offsets = [0, 64], sizes = [1, 32], strides = [1, 1]} : vector<1x320xf32> to vector<1x32xf32>
    %c2 = arith.constant 2 : index
    %c0_99 = arith.constant 0 : index
    %189 = vector.load %arg31[%c2, %c0_99] : memref<10x32xf32, #tpu.memory_space<vmem>>, vector<1x32xf32>
    tpu.vector_store %arg31[%c2, %c0_99], %188 {strides = array<i32>} : memref<10x32xf32, #tpu.memory_space<vmem>>, vector<1x32xf32>,
    %190 = vector.extract_strided_slice %183 {offsets = [0, 96], sizes = [1, 32], strides = [1, 1]} : vector<1x320xf32> to vector<1x32xf32>
    %c3 = arith.constant 3 : index
    %c0_100 = arith.constant 0 : index
    %191 = vector.load %arg31[%c3, %c0_100] : memref<10x32xf32, #tpu.memory_space<vmem>>, vector<1x32xf32>
    tpu.vector_store %arg31[%c3, %c0_100], %190 {strides = array<i32>} : memref<10x32xf32, #tpu.memory_space<vmem>>, vector<1x32xf32>,
    %192 = vector.extract_strided_slice %183 {offsets = [0, 128], sizes = [1, 32], strides = [1, 1]} : vector<1x320xf32> to vector<1x32xf32>
    %c4 = arith.constant 4 : index
    %c0_101 = arith.constant 0 : index
    %193 = vector.load %arg31[%c4, %c0_101] : memref<10x32xf32, #tpu.memory_space<vmem>>, vector<1x32xf32>
    tpu.vector_store %arg31[%c4, %c0_101], %192 {strides = array<i32>} : memref<10x32xf32, #tpu.memory_space<vmem>>, vector<1x32xf32>,
    %194 = vector.extract_strided_slice %183 {offsets = [0, 160], sizes = [1, 32], strides = [1, 1]} : vector<1x320xf32> to vector<1x32xf32>
    %c5 = arith.constant 5 : index
    %c0_102 = arith.constant 0 : index
    %195 = vector.load %arg31[%c5, %c0_102] : memref<10x32xf32, #tpu.memory_space<vmem>>, vector<1x32xf32>
    tpu.vector_store %arg31[%c5, %c0_102], %194 {strides = array<i32>} : memref<10x32xf32, #tpu.memory_space<vmem>>, vector<1x32xf32>,
    %196 = vector.extract_strided_slice %183 {offsets = [0, 192], sizes = [1, 32], strides = [1, 1]} : vector<1x320xf32> to vector<1x32xf32>
    %c6 = arith.constant 6 : index
    %c0_103 = arith.constant 0 : index
    %197 = vector.load %arg31[%c6, %c0_103] : memref<10x32xf32, #tpu.memory_space<vmem>>, vector<1x32xf32>
    tpu.vector_store %arg31[%c6, %c0_103], %196 {strides = array<i32>} : memref<10x32xf32, #tpu.memory_space<vmem>>, vector<1x32xf32>,
    %198 = vector.extract_strided_slice %183 {offsets = [0, 224], sizes = [1, 32], strides = [1, 1]} : vector<1x320xf32> to vector<1x32xf32>
    %c7 = arith.constant 7 : index
    %c0_104 = arith.constant 0 : index
    %199 = vector.load %arg31[%c7, %c0_104] : memref<10x32xf32, #tpu.memory_space<vmem>>, vector<1x32xf32>
    tpu.vector_store %arg31[%c7, %c0_104], %198 {strides = array<i32>} : memref<10x32xf32, #tpu.memory_space<vmem>>, vector<1x32xf32>,
    %200 = vector.extract_strided_slice %183 {offsets = [0, 256], sizes = [1, 32], strides = [1, 1]} : vector<1x320xf32> to vector<1x32xf32>
    %c8_105 = arith.constant 8 : index
    %c0_106 = arith.constant 0 : index
    %201 = vector.load %arg31[%c8_105, %c0_106] : memref<10x32xf32, #tpu.memory_space<vmem>>, vector<1x32xf32>
    tpu.vector_store %arg31[%c8_105, %c0_106], %200 {strides = array<i32>} : memref<10x32xf32, #tpu.memory_space<vmem>>, vector<1x32xf32>,
    %202 = vector.extract_strided_slice %183 {offsets = [0, 288], sizes = [1, 32], strides = [1, 1]} : vector<1x320xf32> to vector<1x32xf32>
    %c9 = arith.constant 9 : index
    %c0_107 = arith.constant 0 : index
    %203 = vector.load %arg31[%c9, %c0_107] : memref<10x32xf32, #tpu.memory_space<vmem>>, vector<1x32xf32>
    tpu.vector_store %arg31[%c9, %c0_107], %202 {strides = array<i32>} : memref<10x32xf32, #tpu.memory_space<vmem>>, vector<1x32xf32>,
    %c0_108 = arith.constant 0 : index
    %c0_109 = arith.constant 0 : index
    %204 = vector.load %arg31[%c0_108, %c0_109] : memref<10x32xf32, #tpu.memory_space<vmem>>, vector<10x32xf32>
    %c0_110 = arith.constant 0 : index
    %c0_111 = arith.constant 0 : index
    %205 = vector.load %arg20[%c0_110, %c0_111] : memref<8x32xf32, #tpu.memory_space<vmem>>, vector<8x32xf32>
    %c0_112 = arith.constant 0 : index
    %c0_113 = arith.constant 0 : index
    %206 = vector.load %arg21[%c0_112, %c0_113] : memref<32x32xf32, #tpu.memory_space<vmem>>, vector<32x32xf32>
    %cst_114 = arith.constant dense<0.000000e+00> : vector<8x32xf32>
    %207 = tpu.matmul %205, %206, %cst_114 {dimension_numbers = #tpu.dot_dimension_numbers<[1], [0], [0], [1], [0, 0, 1, 1], [], []>} : vector<8x32xf32>, vector<32x32xf32>, vector<8x32xf32> -> vector<8x32xf32>
    %c0_115 = arith.constant 0 : index
    %c0_116 = arith.constant 0 : index
    %208 = vector.load %arg22[%c0_115, %c0_116] : memref<1x32xf32, #tpu.memory_space<vmem>>, vector<1x32xf32>
    %209 = vector.broadcast %208 : vector<1x32xf32> to vector<8x32xf32>
    %210 = arith.addf %207, %209 : vector<8x32xf32>
    %cst_117 = arith.constant 0.000000e+00 : f32
    %211 = vector.broadcast %cst_117 : f32 to vector<8x32xf32>
    %212 = arith.cmpf ogt, %210, %211 : vector<8x32xf32>
    %cst_118 = arith.constant 0.00999999977 : f32
    %213 = vector.broadcast %cst_118 : f32 to vector<8x32xf32>
    %214 = arith.mulf %213, %210 : vector<8x32xf32>
    %215 = arith.select %212, %210, %214 : vector<8x32xi1>, vector<8x32xf32>
    %cst_119 = arith.constant dense<0.000000e+00> : vector<8x10xf32>
    %216 = tpu.matmul %215, %204, %cst_119 {dimension_numbers = #tpu.dot_dimension_numbers<[1], [1], [0], [0], [0, 0, 1, 0], [], []>} : vector<8x32xf32>, vector<10x32xf32>, vector<8x10xf32> -> vector<8x10xf32>
    %cst_120 = arith.constant dense<0xFF800000> : vector<8xf32>
    %217 = vector.multi_reduction <maximumf>, %216, %cst_120 [1] : vector<8x10xf32> to vector<8xf32>
    %218 = vector.shape_cast %217 : vector<8xf32> to vector<8x1xf32>
    %219 = vector.broadcast %218 : vector<8x1xf32> to vector<8x10xf32>
    %220 = arith.subf %216, %219 : vector<8x10xf32>
    %221 = math.exp %220 : vector<8x10xf32>
    %cst_121 = arith.constant dense<0.000000e+00> : vector<8xf32>
    %222 = vector.multi_reduction <add>, %221, %cst_121 [1] : vector<8x10xf32> to vector<8xf32>
    %223 = vector.shape_cast %222 : vector<8xf32> to vector<8x1xf32>
    %224 = tpu.reciprocal %223 {approx = true} : vector<8x1xf32> -> vector<8x1xf32>
    %225 = vector.broadcast %224 : vector<8x1xf32> to vector<8x10xf32>
    %226 = arith.mulf %221, %225 : vector<8x10xf32>
    %227 = math.log %223 : vector<8x1xf32>
    %228 = arith.addf %218, %227 : vector<8x1xf32>
    %229 = vector.broadcast %228 : vector<8x1xf32> to vector<8x10xf32>
    %230 = arith.subf %216, %229 : vector<8x10xf32>
    %c0_122 = arith.constant 0 : index
    %c0_123 = arith.constant 0 : index
    %c0_124 = arith.constant 0 : index
    %231 = vector.load %arg23[%c0_122, %c0_123, %c0_124] : memref<10x32x32xf32, #tpu.memory_space<vmem>>, vector<1x32x32xf32>
    %232 = vector.shape_cast %231 : vector<1x32x32xf32> to vector<32x32xf32>
    %cst_125 = arith.constant dense<0.000000e+00> : vector<8x32xf32>
    %233 = tpu.matmul %215, %232, %cst_125 {dimension_numbers = #tpu.dot_dimension_numbers<[1], [0], [0], [1], [0, 0, 1, 1], [], []>} : vector<8x32xf32>, vector<32x32xf32>, vector<8x32xf32> -> vector<8x32xf32>
    %234 = vector.extract_strided_slice %226 {offsets = [0, 0], sizes = [8, 1], strides = [1, 1]} : vector<8x10xf32> to vector<8x1xf32>
    %235 = vector.broadcast %234 : vector<8x1xf32> to vector<8x32xf32>
    %236 = arith.mulf %233, %235 : vector<8x32xf32>
    %c1_126 = arith.constant 1 : index
    %c0_127 = arith.constant 0 : index
    %c0_128 = arith.constant 0 : index
    %237 = vector.load %arg23[%c1_126, %c0_127, %c0_128] : memref<10x32x32xf32, #tpu.memory_space<vmem>>, vector<1x32x32xf32>
    %238 = vector.shape_cast %237 : vector<1x32x32xf32> to vector<32x32xf32>
    %cst_129 = arith.constant dense<0.000000e+00> : vector<8x32xf32>
    %239 = tpu.matmul %215, %238, %cst_129 {dimension_numbers = #tpu.dot_dimension_numbers<[1], [0], [0], [1], [0, 0, 1, 1], [], []>} : vector<8x32xf32>, vector<32x32xf32>, vector<8x32xf32> -> vector<8x32xf32>
    %240 = vector.extract_strided_slice %226 {offsets = [0, 1], sizes = [8, 1], strides = [1, 1]} : vector<8x10xf32> to vector<8x1xf32>
    %241 = vector.broadcast %240 : vector<8x1xf32> to vector<8x32xf32>
    %242 = arith.mulf %239, %241 : vector<8x32xf32>
    %c2_130 = arith.constant 2 : index
    %c0_131 = arith.constant 0 : index
    %c0_132 = arith.constant 0 : index
    %243 = vector.load %arg23[%c2_130, %c0_131, %c0_132] : memref<10x32x32xf32, #tpu.memory_space<vmem>>, vector<1x32x32xf32>
    %244 = vector.shape_cast %243 : vector<1x32x32xf32> to vector<32x32xf32>
    %cst_133 = arith.constant dense<0.000000e+00> : vector<8x32xf32>
    %245 = tpu.matmul %215, %244, %cst_133 {dimension_numbers = #tpu.dot_dimension_numbers<[1], [0], [0], [1], [0, 0, 1, 1], [], []>} : vector<8x32xf32>, vector<32x32xf32>, vector<8x32xf32> -> vector<8x32xf32>
    %246 = vector.extract_strided_slice %226 {offsets = [0, 2], sizes = [8, 1], strides = [1, 1]} : vector<8x10xf32> to vector<8x1xf32>
    %247 = vector.broadcast %246 : vector<8x1xf32> to vector<8x32xf32>
    %248 = arith.mulf %245, %247 : vector<8x32xf32>
    %c3_134 = arith.constant 3 : index
    %c0_135 = arith.constant 0 : index
    %c0_136 = arith.constant 0 : index
    %249 = vector.load %arg23[%c3_134, %c0_135, %c0_136] : memref<10x32x32xf32, #tpu.memory_space<vmem>>, vector<1x32x32xf32>
    %250 = vector.shape_cast %249 : vector<1x32x32xf32> to vector<32x32xf32>
    %cst_137 = arith.constant dense<0.000000e+00> : vector<8x32xf32>
    %251 = tpu.matmul %215, %250, %cst_137 {dimension_numbers = #tpu.dot_dimension_numbers<[1], [0], [0], [1], [0, 0, 1, 1], [], []>} : vector<8x32xf32>, vector<32x32xf32>, vector<8x32xf32> -> vector<8x32xf32>
    %252 = vector.extract_strided_slice %226 {offsets = [0, 3], sizes = [8, 1], strides = [1, 1]} : vector<8x10xf32> to vector<8x1xf32>
    %253 = vector.broadcast %252 : vector<8x1xf32> to vector<8x32xf32>
    %254 = arith.mulf %251, %253 : vector<8x32xf32>
    %c4_138 = arith.constant 4 : index
    %c0_139 = arith.constant 0 : index
    %c0_140 = arith.constant 0 : index
    %255 = vector.load %arg23[%c4_138, %c0_139, %c0_140] : memref<10x32x32xf32, #tpu.memory_space<vmem>>, vector<1x32x32xf32>
    %256 = vector.shape_cast %255 : vector<1x32x32xf32> to vector<32x32xf32>
    %cst_141 = arith.constant dense<0.000000e+00> : vector<8x32xf32>
    %257 = tpu.matmul %215, %256, %cst_141 {dimension_numbers = #tpu.dot_dimension_numbers<[1], [0], [0], [1], [0, 0, 1, 1], [], []>} : vector<8x32xf32>, vector<32x32xf32>, vector<8x32xf32> -> vector<8x32xf32>
    %258 = vector.extract_strided_slice %226 {offsets = [0, 4], sizes = [8, 1], strides = [1, 1]} : vector<8x10xf32> to vector<8x1xf32>
    %259 = vector.broadcast %258 : vector<8x1xf32> to vector<8x32xf32>
    %260 = arith.mulf %257, %259 : vector<8x32xf32>
    %c5_142 = arith.constant 5 : index
    %c0_143 = arith.constant 0 : index
    %c0_144 = arith.constant 0 : index
    %261 = vector.load %arg23[%c5_142, %c0_143, %c0_144] : memref<10x32x32xf32, #tpu.memory_space<vmem>>, vector<1x32x32xf32>
    %262 = vector.shape_cast %261 : vector<1x32x32xf32> to vector<32x32xf32>
    %cst_145 = arith.constant dense<0.000000e+00> : vector<8x32xf32>
    %263 = tpu.matmul %215, %262, %cst_145 {dimension_numbers = #tpu.dot_dimension_numbers<[1], [0], [0], [1], [0, 0, 1, 1], [], []>} : vector<8x32xf32>, vector<32x32xf32>, vector<8x32xf32> -> vector<8x32xf32>
    %264 = vector.extract_strided_slice %226 {offsets = [0, 5], sizes = [8, 1], strides = [1, 1]} : vector<8x10xf32> to vector<8x1xf32>
    %265 = vector.broadcast %264 : vector<8x1xf32> to vector<8x32xf32>
    %266 = arith.mulf %263, %265 : vector<8x32xf32>
    %c6_146 = arith.constant 6 : index
    %c0_147 = arith.constant 0 : index
    %c0_148 = arith.constant 0 : index
    %267 = vector.load %arg23[%c6_146, %c0_147, %c0_148] : memref<10x32x32xf32, #tpu.memory_space<vmem>>, vector<1x32x32xf32>
    %268 = vector.shape_cast %267 : vector<1x32x32xf32> to vector<32x32xf32>
    %cst_149 = arith.constant dense<0.000000e+00> : vector<8x32xf32>
    %269 = tpu.matmul %215, %268, %cst_149 {dimension_numbers = #tpu.dot_dimension_numbers<[1], [0], [0], [1], [0, 0, 1, 1], [], []>} : vector<8x32xf32>, vector<32x32xf32>, vector<8x32xf32> -> vector<8x32xf32>
    %270 = vector.extract_strided_slice %226 {offsets = [0, 6], sizes = [8, 1], strides = [1, 1]} : vector<8x10xf32> to vector<8x1xf32>
    %271 = vector.broadcast %270 : vector<8x1xf32> to vector<8x32xf32>
    %272 = arith.mulf %269, %271 : vector<8x32xf32>
    %c7_150 = arith.constant 7 : index
    %c0_151 = arith.constant 0 : index
    %c0_152 = arith.constant 0 : index
    %273 = vector.load %arg23[%c7_150, %c0_151, %c0_152] : memref<10x32x32xf32, #tpu.memory_space<vmem>>, vector<1x32x32xf32>
    %274 = vector.shape_cast %273 : vector<1x32x32xf32> to vector<32x32xf32>
    %cst_153 = arith.constant dense<0.000000e+00> : vector<8x32xf32>
    %275 = tpu.matmul %215, %274, %cst_153 {dimension_numbers = #tpu.dot_dimension_numbers<[1], [0], [0], [1], [0, 0, 1, 1], [], []>} : vector<8x32xf32>, vector<32x32xf32>, vector<8x32xf32> -> vector<8x32xf32>
    %276 = vector.extract_strided_slice %226 {offsets = [0, 7], sizes = [8, 1], strides = [1, 1]} : vector<8x10xf32> to vector<8x1xf32>
    %277 = vector.broadcast %276 : vector<8x1xf32> to vector<8x32xf32>
    %278 = arith.mulf %275, %277 : vector<8x32xf32>
    %c8_154 = arith.constant 8 : index
    %c0_155 = arith.constant 0 : index
    %c0_156 = arith.constant 0 : index
    %279 = vector.load %arg23[%c8_154, %c0_155, %c0_156] : memref<10x32x32xf32, #tpu.memory_space<vmem>>, vector<1x32x32xf32>
    %280 = vector.shape_cast %279 : vector<1x32x32xf32> to vector<32x32xf32>
    %cst_157 = arith.constant dense<0.000000e+00> : vector<8x32xf32>
    %281 = tpu.matmul %215, %280, %cst_157 {dimension_numbers = #tpu.dot_dimension_numbers<[1], [0], [0], [1], [0, 0, 1, 1], [], []>} : vector<8x32xf32>, vector<32x32xf32>, vector<8x32xf32> -> vector<8x32xf32>
    %282 = vector.extract_strided_slice %226 {offsets = [0, 8], sizes = [8, 1], strides = [1, 1]} : vector<8x10xf32> to vector<8x1xf32>
    %283 = vector.broadcast %282 : vector<8x1xf32> to vector<8x32xf32>
    %284 = arith.mulf %281, %283 : vector<8x32xf32>
    %c9_158 = arith.constant 9 : index
    %c0_159 = arith.constant 0 : index
    %c0_160 = arith.constant 0 : index
    %285 = vector.load %arg23[%c9_158, %c0_159, %c0_160] : memref<10x32x32xf32, #tpu.memory_space<vmem>>, vector<1x32x32xf32>
    %286 = vector.shape_cast %285 : vector<1x32x32xf32> to vector<32x32xf32>
    %cst_161 = arith.constant dense<0.000000e+00> : vector<8x32xf32>
    %287 = tpu.matmul %215, %286, %cst_161 {dimension_numbers = #tpu.dot_dimension_numbers<[1], [0], [0], [1], [0, 0, 1, 1], [], []>} : vector<8x32xf32>, vector<32x32xf32>, vector<8x32xf32> -> vector<8x32xf32>
    %288 = vector.extract_strided_slice %226 {offsets = [0, 9], sizes = [8, 1], strides = [1, 1]} : vector<8x10xf32> to vector<8x1xf32>
    %289 = vector.broadcast %288 : vector<8x1xf32> to vector<8x32xf32>
    %290 = arith.mulf %287, %289 : vector<8x32xf32>
    %291 = arith.addf %236, %242 : vector<8x32xf32>
    %292 = arith.addf %248, %254 : vector<8x32xf32>
    %293 = arith.addf %260, %266 : vector<8x32xf32>
    %294 = arith.addf %272, %278 : vector<8x32xf32>
    %295 = arith.addf %284, %290 : vector<8x32xf32>
    %296 = arith.addf %291, %292 : vector<8x32xf32>
    %297 = arith.addf %293, %294 : vector<8x32xf32>
    %298 = arith.addf %296, %297 : vector<8x32xf32>
    %299 = arith.addf %298, %295 : vector<8x32xf32>
    %c0_162 = arith.constant 0 : index
    %c0_163 = arith.constant 0 : index
    %300 = vector.load %arg27[%c0_162, %c0_163] : memref<8x32xf32, #tpu.memory_space<vmem>>, vector<8x32xf32>
    tpu.vector_store %arg27[%c0_162, %c0_163], %299 {strides = array<i32>} : memref<8x32xf32, #tpu.memory_space<vmem>>, vector<8x32xf32>,
    %c0_164 = arith.constant 0 : index
    %c0_165 = arith.constant 0 : index
    %301 = vector.load %arg24[%c0_164, %c0_165] : memref<32x1xf32, #tpu.memory_space<vmem>>, vector<32x1xf32>
    %cst_166 = arith.constant dense<0.000000e+00> : vector<8x1xf32>
    %302 = tpu.matmul %299, %301, %cst_166 {dimension_numbers = #tpu.dot_dimension_numbers<[1], [0], [0], [1], [0, 0, 1, 1], [], []>} : vector<8x32xf32>, vector<32x1xf32>, vector<8x1xf32> -> vector<8x1xf32>
    %c0_167 = arith.constant 0 : index
    %c0_168 = arith.constant 0 : index
    %303 = vector.load %arg25[%c0_167, %c0_168] : memref<1x1xf32, #tpu.memory_space<vmem>>, vector<1x1xf32>
    %304 = vector.broadcast %303 : vector<1x1xf32> to vector<8x1xf32>
    %305 = arith.addf %302, %304 : vector<8x1xf32>
    %cst_169 = arith.constant 0.000000e+00 : f32
    %306 = vector.broadcast %cst_169 : f32 to vector<8x1xf32>
    %307 = arith.cmpf ogt, %305, %306 : vector<8x1xf32>
    %cst_170 = arith.constant 0.00999999977 : f32
    %308 = vector.broadcast %cst_170 : f32 to vector<8x1xf32>
    %309 = arith.mulf %308, %305 : vector<8x1xf32>
    %310 = arith.select %307, %305, %309 : vector<8x1xi1>, vector<8x1xf32>
    %c0_171 = arith.constant 0 : index
    %c0_172 = arith.constant 0 : index
    %311 = vector.load %arg26[%c0_171, %c0_172] : memref<8x1xf32, #tpu.memory_space<vmem>>, vector<8x1xf32>
    tpu.vector_store %arg26[%c0_171, %c0_172], %310 {strides = array<i32>} : memref<8x1xf32, #tpu.memory_space<vmem>>, vector<8x1xf32>,
    %312 = arith.mulf %204, %204 : vector<10x32xf32>
    %cst_173 = arith.constant dense<0.000000e+00> : vector<10xf32>
    %313 = vector.multi_reduction <add>, %312, %cst_173 [1] : vector<10x32xf32> to vector<10xf32>
    %314 = vector.shape_cast %313 : vector<10xf32> to vector<10x1xf32>
    %315 = math.sqrt %314 : vector<10x1xf32>
    %cst_174 = arith.constant 9.99999993E-9 : f32
    %316 = vector.broadcast %cst_174 : f32 to vector<10x1xf32>
    %317 = arith.maximumf %315, %316 : vector<10x1xf32>
    %318 = tpu.reciprocal %317 : vector<10x1xf32> -> vector<10x1xf32>
    %319 = vector.broadcast %318 : vector<10x1xf32> to vector<10x32xf32>
    %320 = arith.mulf %204, %319 : vector<10x32xf32>
    %cst_175 = arith.constant dense<0.000000e+00> : vector<10x10xf32>
    %321 = tpu.matmul %320, %320, %cst_175 {dimension_numbers = #tpu.dot_dimension_numbers<[1], [1], [0], [0], [0, 0, 1, 0], [], []>} : vector<10x32xf32>, vector<10x32xf32>, vector<10x10xf32> -> vector<10x10xf32>
    %322 = tpu.iota {dimensions = array<i32: 0>} : vector<10x10xi32>
    %323 = tpu.iota {dimensions = array<i32: 1>} : vector<10x10xi32>
    %324 = arith.cmpi eq, %322, %323 : vector<10x10xi32>
    %cst_176 = arith.constant 0.000000e+00 : f32
    %325 = vector.broadcast %cst_176 : f32 to vector<10x10xf32>
    %326 = arith.select %324, %325, %321 : vector<10x10xi1>, vector<10x10xf32>
    %327 = math.absf %326 : vector<10x10xf32>
    %328 = vector.shape_cast %327 : vector<10x10xf32> to vector<1x10x10xf32>
    %cst_177 = arith.constant dense<0.000000e+00> : vector<1xf32>
    %329 = vector.multi_reduction <add>, %328, %cst_177 [1, 2] : vector<1x10x10xf32> to vector<1xf32>
    %330 = vector.shape_cast %329 : vector<1xf32> to vector<1x1x1xf32>
    %331 = vector.extract %330[0, 0, 0] : f32 from vector<1x1x1xf32>
    %cst_178 = arith.constant 1.000000e+02 : f32
    %332 = arith.divf %331, %cst_178 : f32
    %cst_179 = arith.constant -2.30258512 : f32
    %333 = vector.broadcast %cst_179 : f32 to vector<8x10xf32>
    %334 = arith.subf %333, %230 : vector<8x10xf32>
    %335 = vector.shape_cast %334 : vector<8x10xf32> to vector<1x8x10xf32>
    %cst_180 = arith.constant dense<0.000000e+00> : vector<1xf32>
    %336 = vector.multi_reduction <add>, %335, %cst_180 [1, 2] : vector<1x8x10xf32> to vector<1xf32>
    %337 = vector.shape_cast %336 : vector<1xf32> to vector<1x1x1xf32>
    %338 = vector.extract %337[0, 0, 0] : f32 from vector<1x1x1xf32>
    %cst_181 = arith.constant 1.000000e-01 : f32
    %339 = arith.mulf %cst_181, %338 : f32
    %cst_182 = arith.constant 8.000000e+00 : f32
    %340 = arith.divf %339, %cst_182 : f32
    %341 = arith.addf %332, %340 : f32
    %342 = vector.broadcast %341 : f32 to vector<1x1xf32>
    %c0_183 = arith.constant 0 : index
    %c0_184 = arith.constant 0 : index
    %343 = vector.load %arg28[%c0_183, %c0_184] : memref<1x1xf32, #tpu.memory_space<vmem>>, vector<1x1xf32>
    tpu.vector_store %arg28[%c0_183, %c0_184], %342 {strides = array<i32>} : memref<1x1xf32, #tpu.memory_space<vmem>>, vector<1x1xf32>,
    return
  }
}

</mosaic_0001>

<bundles_post_ra>
// kernel: topic_disen_forward.1
= control target key start
LH: loop header
LB: loop body
LE: loop exit
PB: predicated region body
PF: predicated region fallthrough
CT: control target
= control target key end

     0   :  { %s2925_s0 = inlined_call_operand.hbm [shape: f32[5,16], index: 0, kind: input, shape index: {}]   ;;  %s2926_s1 = inlined_call_operand.vmem [shape: f32[16,32], index: 1, kind: input, shape index: {}]   ;;  %s2927_s2 = inlined_call_operand.vmem [shape: f32[1,32], index: 2, kind: input, shape index: {}]   ;;  %s2928_s3 = inlined_call_operand.vmem [shape: f32[32,32], index: 3, kind: input, shape index: {}]   ;;  %s2929_s4 = inlined_call_operand.vmem [shape: f32[32,32], index: 4, kind: input, shape index: {}]   ;;  %s2930_s5 = inlined_call_operand.vmem [shape: f32[32,32], index: 5, kind: input, shape index: {}]   ;;  %s2931_s6 = inlined_call_operand.vmem [shape: f32[1,32], index: 6, kind: input, shape index: {}]   ;;  %s2932_s7 = inlined_call_operand.vmem [shape: f32[1,32], index: 7, kind: input, shape index: {}]   ;;  %s2933_s8 = inlined_call_operand.hbm [shape: f32[1,32], index: 8, kind: input, shape index: {}]   ;;  %s2934_s9 = inlined_call_operand.hbm [shape: f32[32,32], index: 9, kind: input, shape index: {}]   ;;  %s2935_s10 = inlined_call_operand.hbm [shape: f32[1,32], index: 10, kind: input, shape index: {}]   ;;  %s2936_s11 = inlined_call_operand.hbm [shape: f32[1,32], index: 11, kind: input, shape index: {}]   ;;  %s2937_s12 = inlined_call_operand.hbm [shape: f32[1,32], index: 12, kind: input, shape index: {}]   ;;  %s2938_s13 = inlined_call_operand.hbm [shape: f32[32,64], index: 13, kind: input, shape index: {}]   ;;  %s2939_s14 = inlined_call_operand.hbm [shape: f32[1,64], index: 14, kind: input, shape index: {}]   ;;  %s2940_s15 = inlined_call_operand.vmem [shape: f32[64,32], index: 15, kind: input, shape index: {}]   ;;  %s2941_s16 = inlined_call_operand.hbm [shape: f32[1,32], index: 16, kind: input, shape index: {}]   ;;  %s2942_s17 = inlined_call_operand.hbm [shape: f32[1,32], index: 17, kind: input, shape index: {}]   ;;  %s2943_s18 = inlined_call_operand.hbm [shape: f32[1,32], index: 18, kind: input, shape index: {}]   ;;  %s2944_s19 = inlined_call_operand.hbm [shape: f32[160,320], index: 19, kind: input, shape index: {}]   ;;  %s2945_s20 = inlined_call_operand.hbm [shape: f32[8,32], index: 20, kind: input, shape index: {}]   ;;  %s2946_s21 = inlined_call_operand.hbm [shape: f32[32,32], index: 21, kind: input, shape index: {}]   ;;  %s2947_s22 = inlined_call_operand.hbm [shape: f32[1,32], index: 22, kind: input, shape index: {}]   ;;  %s2948_s23 = inlined_call_operand.hbm [shape: f32[10,32,32], index: 23, kind: input, shape index: {}]   ;;  %s2949_s24 = inlined_call_operand.vmem [shape: f32[32,1], index: 24, kind: input, shape index: {}]   ;;  %s2950_s25 = inlined_call_operand.<no memory space> [shape: f32[1,1], index: 25, kind: input, shape index: {}]   ;;  %s2951_s26 = inlined_call_operand.vmem [shape: f32[8,1], index: 26, kind: output, shape index: {0}]   ;;  %s2952_s27 = inlined_call_operand.hbm [shape: f32[8,32], index: 27, kind: output, shape index: {1}]   ;;  %s2953_s28 = inlined_call_operand.hbm [shape: f32[1,1], index: 28, kind: output, shape index: {2}]  }
   0x1   :  { %2958 = sst [smem:[#allocation46_spill]] %s2925_s0  ;;  %v34_v0 = vstv %s2950_s25 }
   0x2   :  { %2959 = sst [smem:[#allocation47_spill]] %s2926_s1  ;;  %35 = vst [vmem:[#allocation5] sm:$0x1] %v34_v0 }
   0x3   :  { %2960 = sst [smem:[#allocation48_spill]] %s2927_s2 }
   0x4   :  { %2961 = sst [smem:[#allocation49_spill]] %s2928_s3 }
   0x5   :  { %2962 = sst [smem:[#allocation50_spill]] %s2929_s4 }
   0x6   :  { %2963 = sst [smem:[#allocation51_spill]] %s2930_s5 }
   0x7   :  { %2964 = sst [smem:[#allocation52_spill]] %s2931_s6 }
   0x8   :  { %2965 = sst [smem:[#allocation53_spill]] %s2932_s7 }
   0x9   :  { %2966 = sst [smem:[#allocation54_spill]] %s2933_s8 }
   0xa   :  { %2967 = sst [smem:[#allocation55_spill]] %s2934_s9 }
   0xb   :  { %2968 = sst [smem:[#allocation56_spill]] %s2935_s10 }
   0xc   :  { %2969 = sst [smem:[#allocation57_spill]] %s2936_s11 }
   0xd   :  { %2970 = sst [smem:[#allocation58_spill]] %s2937_s12 }
   0xe   :  { %2971 = sst [smem:[#allocation59_spill]] %s2951_s26 }
   0xf   :  { %36 = vsyncpa [#allocation7], 0 }
  0x10   :  { %37 = vsyncpa [#allocation10], 0 }
  0x11   :  { %38 = vsyncpa [#allocation13], 0 }
  0x12   :  { %39 = vsyncpa [#allocation16], 0 }
  0x13   :  { %40 = vsyncpa [#allocation19], 0 }
  0x14   :  { %41 = vsyncpa [#allocation22], 0 }
  0x15   :  { %42 = vsyncpa [#allocation25], 0 }
  0x16   :  { %43 = vsyncpa [#allocation28], 0 }
  0x17   :  { %44 = vsyncpa [#allocation31], 0 }
  0x18   :  { %45 = vsyncpa [#allocation8], 0  ;;  %s2972_s3 = sld [smem:[#allocation54_spill]] }
  0x1e   :  { %s77_s6 = sshll.u32 %s2972_s3, 4  ;;  %s78_s6 = int_to_ptr.hbm [resolvable:$true] %s77_s6 }
  0x1f   :  { %46 = vsyncpa [#allocation34], 0  ;;  %s2412_s10 = smov [#allocation9]   ;;  %s2973_s29 = sld [smem:[#allocation56_spill]] }
  0x20   :  { %s79_s0 = sshll.u32 %s2412_s10, 4  ;;  %s2413_s7 = smov [#allocation12]   ;;  %s80_s0 = int_to_ptr.vmem [resolvable:$true] %s79_s0 }
  0x21   :  { %82 = dma.hbm_to_vmem [thread:$0]  %s78_s6, 16, %s80_s0, [#allocation10]  }
  0x22   :  { %s103_s12 = sshll.u32 %s2413_s7, 4  ;;  %s2974_s8 = sld [smem:[#allocation58_spill]]  ;;  %s104_s12 = int_to_ptr.vmem [resolvable:$true] %s103_s12 }
  0x23   :  { %s147_s3 = sshll.u32 %s2939_s14, 4  ;;  %s2414_s10 = smov [#allocation15]   ;;  %s148_s3 = int_to_ptr.hbm [resolvable:$true] %s147_s3 }
  0x24   :  { %s125_s26 = sshll.u32 %s2414_s10, 4  ;;  %s2415_s6 = smov [#allocation18]   ;;  %s126_s26 = int_to_ptr.vmem [resolvable:$true] %s125_s26 }
  0x25   :  { %s101_s2 = sshll.u32 %s2973_s29, 4  ;;  %s149_s0 = sshll.u32 %s2415_s6, 4  ;;  %s102_s2 = int_to_ptr.hbm [resolvable:$true] %s101_s2  ;;  %s150_s0 = int_to_ptr.vmem [resolvable:$true] %s149_s0 }
  0x26   :  { %106 = dma.hbm_to_vmem [thread:$0]  %s102_s2, 16, %s104_s12, [#allocation13]  }
  0x27   :  { %s171_s29 = sshll.u32 %s2942_s17, 4  ;;  %s192_s12 = sshll.u32 %s2944_s19, 4  ;;  %s172_s29 = int_to_ptr.hbm [resolvable:$true] %s171_s29  ;;  %s193_s12 = int_to_ptr.hbm [resolvable:$true] %s192_s12 }
  0x28   :  { %s123_s5 = sshll.u32 %s2974_s8, 4  ;;  %s2416_s1 = smov [#allocation21]   ;;  %s124_s5 = int_to_ptr.hbm [resolvable:$true] %s123_s5 }
  0x29   :  { %128 = dma.hbm_to_vmem [thread:$0]  %s124_s5, 16, %s126_s26, [#allocation16]  }
  0x2a   :  { %152 = dma.hbm_to_vmem [thread:$0]  %s148_s3, 16, %s150_s0, [#allocation19]  }
  0x2b   :  { %s173_s14 = sshll.u32 %s2416_s1, 4  ;;  %s2417_s4 = smov [#allocation24]   ;;  %s174_s14 = int_to_ptr.vmem [resolvable:$true] %s173_s14 }
  0x2c   :  { %176 = dma.hbm_to_vmem [thread:$0]  %s172_s29, 16, %s174_s14, [#allocation22]  }
  0x2d   :  { %s194_s26 = sshll.u32 %s2417_s4, 4  ;;  %s2418_s8 = smov 384   ;;  %s195_s26 = int_to_ptr.vmem [resolvable:$true] %s194_s26 }
  0x2e   :  { %s2419_s5 = smov 24   ;;  %s216_s30 = sshll.u32 %s2946_s21, 4  ;;  %s217_s30 = int_to_ptr.hbm [resolvable:$true] %s216_s30 }
  0x2f   :  { %200 = dma.hbm_to_vmem [thread:$0]  %s193_s12, 7680, %s195_s26, [#allocation25], %s2418_s8, %s2418_s8, %s2419_s5  }
  0x30   :  { %s2420_s3 = smov [#allocation27]   ;;  %s2975_s0 = sld [smem:[#allocation46_spill]] }
  0x31   :  { %s218_s10 = sshll.u32 %s2420_s3, 4  ;;  %s2421_s11 = smov 128   ;;  %s219_s10 = int_to_ptr.vmem [resolvable:$true] %s218_s10 }
  0x32   :  { %s2422_s29 = smov 8   ;;  %s2423_s7 = smov [#allocation6]  }
  0x33   :  { %224 = dma.hbm_to_vmem [thread:$0]  %s217_s30, 512, %s219_s10, [#allocation28], %s2421_s11, %s2421_s11, %s2422_s29  }
  0x34   :  { %s54_s2 = sshll.u32 %s2423_s7, 4  ;;  %s2976_s21 = sld [smem:[#allocation55_spill]]  ;;  %s55_s2 = int_to_ptr.vmem [resolvable:$true] %s54_s2 }
  0x35   :  { %s2977_s8 = sld [smem:[#allocation57_spill]]  ;;  %s2424_s9 = smov [#allocation11]  }
  0x36   :  { %s52_s25 = sshll.u32 %s2975_s0, 4  ;;  %s89_s3 = sshll.u32 %s2424_s9, 4  ;;  %s53_s25 = int_to_ptr.hbm [resolvable:$true] %s52_s25  ;;  %s90_s3 = int_to_ptr.vmem [resolvable:$true] %s89_s3 }
  0x37   :  { %57 = dma.hbm_to_vmem [thread:$0]  %s53_s25, 128, %s55_s2, [#allocation7]  }
  0x38   :  { %s2425_s30 = smov [#allocation14]   ;;  %s133_s0 = sshll.u32 %s2938_s13, 4  ;;  %s134_s0 = int_to_ptr.hbm [resolvable:$true] %s133_s0 }
  0x39   :  { %s114_s10 = sshll.u32 %s2425_s30, 4  ;;  %s160_s2 = sshll.u32 %s2941_s16, 4  ;;  %s115_s10 = int_to_ptr.vmem [resolvable:$true] %s114_s10  ;;  %s161_s2 = int_to_ptr.hbm [resolvable:$true] %s160_s2 }
  0x3a   :  { %s87_s14 = sshll.u32 %s2976_s21, 4  ;;  %s2426_s12 = smov [#allocation17]   ;;  %s88_s14 = int_to_ptr.hbm [resolvable:$true] %s87_s14 }
  0x3b   :  { %s112_s17 = sshll.u32 %s2977_s8, 4  ;;  %s135_s1 = sshll.u32 %s2426_s12, 4  ;;  %s113_s17 = int_to_ptr.hbm [resolvable:$true] %s112_s17  ;;  %s136_s1 = int_to_ptr.vmem [resolvable:$true] %s135_s1 }
  0x3c   :  { %95 = dma.hbm_to_vmem [thread:$0]  %s88_s14, 512, %s90_s3, [#allocation10], %s2421_s11, %s2421_s11, %s2422_s29  }
  0x3d   :  { %117 = dma.hbm_to_vmem [thread:$0]  %s113_s17, 16, %s115_s10, [#allocation13]  }
  0x3e   :  { %141 = dma.hbm_to_vmem [thread:$0]  %s134_s0, 512, %s136_s1, [#allocation16], %s2421_s11, %s2421_s11, %s2422_s29  }
  0x3f   :  { %s2427_s21 = smov [#allocation20]   ;;  %s182_s13 = sshll.u32 %s2943_s18, 4  ;;  %s183_s13 = int_to_ptr.hbm [resolvable:$true] %s182_s13 }
  0x40   :  { %s162_s14 = sshll.u32 %s2427_s21, 4  ;;  %s206_s16 = sshll.u32 %s2945_s20, 4  ;;  %s163_s14 = int_to_ptr.vmem [resolvable:$true] %s162_s14  ;;  %s207_s16 = int_to_ptr.hbm [resolvable:$true] %s206_s16 }
  0x41   :  { %165 = dma.hbm_to_vmem [thread:$0]  %s161_s2, 16, %s163_s14, [#allocation19]  }
  0x42   :  { %s2428_s9 = smov [#allocation23]   ;;  %s2429_s30 = smov [#allocation26]  }
  0x43   :  { %s184_s3 = sshll.u32 %s2428_s9, 4  ;;  %s208_s10 = sshll.u32 %s2429_s30, 4  ;;  %s185_s3 = int_to_ptr.vmem [resolvable:$true] %s184_s3  ;;  %s209_s10 = int_to_ptr.vmem [resolvable:$true] %s208_s10 }
  0x44   :  { %187 = dma.hbm_to_vmem [thread:$0]  %s183_s13, 16, %s185_s3, [#allocation22]  }
  0x45   :  { %s230_s0 = sshll.u32 %s2947_s22, 4  ;;  %s240_s7 = sshll.u32 %s2948_s23, 4  ;;  %s231_s0 = int_to_ptr.hbm [resolvable:$true] %s230_s0  ;;  %s241_s7 = int_to_ptr.hbm [resolvable:$true] %s240_s7 }
  0x46   :  { %211 = dma.hbm_to_vmem [thread:$0]  %s207_s16, 128, %s209_s10, [#allocation25]  }
  0x47   :  { %s2430_s2 = smov [#allocation29]   ;;  %s2431_s12 = smov [#allocation30]  }
  0x48   :  { %s232_s20 = sshll.u32 %s2430_s2, 4  ;;  %s242_s1 = sshll.u32 %s2431_s12, 4  ;;  %s233_s20 = int_to_ptr.vmem [resolvable:$true] %s232_s20  ;;  %s243_s1 = int_to_ptr.vmem [resolvable:$true] %s242_s1 }
  0x49   :  { %235 = dma.hbm_to_vmem [thread:$0]  %s231_s0, 16, %s233_s20, [#allocation28]  }
  0x4a   :  { %248 = dma.hbm_to_vmem [thread:$0]  %s241_s7, 5120, %s243_s1, [#allocation31], %s2421_s11, %s2421_s11, %s2422_s29  }
  0x4b   :  { %2390 = dma.done.wait [#allocation7], 128  }
  0x4c   :  { %2391 = vsyncadd [#allocation7], 4294967168 }
  0x4d   :  { %2392 = dma.done.wait [#allocation10], 528  }
  0x4e   :  { %2393 = vsyncadd [#allocation10], 4294966768 }
  0x4f   :  { %2394 = dma.done.wait [#allocation13], 32  }
  0x50   :  { %2395 = vsyncadd [#allocation13], 4294967264 }
  0x51   :  { %2396 = dma.done.wait [#allocation16], 528  }
  0x52   :  { %2397 = vsyncadd [#allocation16], 4294966768 }
  0x53   :  { %2398 = dma.done.wait [#allocation19], 32  }
  0x54   :  { %2399 = vsyncadd [#allocation19], 4294967264 }
  0x55   :  { %2400 = dma.done.wait [#allocation22], 32  }
  0x56   :  { %2401 = vsyncadd [#allocation22], 4294967264 }
  0x57   :  { %2402 = dma.done.wait [#allocation25], 7808  }
  0x58   :  { %2403 = vsyncadd [#allocation25], 4294959488 }
  0x59   :  { %2404 = dma.done.wait [#allocation28], 528  }
  0x5a   :  { %2405 = vsyncadd [#allocation28], 4294966768 }
  0x5b   :  { %2406 = dma.done.wait [#allocation31], 5120  }
  0x5c   :  { %2407 = vsyncadd [#allocation31], 4294962176  ;;  %s2978_s11 = sld [smem:[#allocation47_spill]]  ;;  %v317_v3 = vld [vmem:[#allocation6] sm:$0x1f]  ;;  %vm324_vm0 = vcmask 130048  }
  0x5d   :  { %s2979_s13 = sld [smem:[#allocation50_spill]]  ;;  %vm359_vm2 = vcmask 261120   ;;  %v1908_v22 = vld [vmem:[#allocation9] ss:$0 sm:$0xff]  ;;  %vm483_vm3 = vcmask 1044480   ;;  %vm439_vm4 = vcmask 64512  }
  0x5e   :  { %s2980_s16 = sld [smem:[#allocation51_spill]]  ;;  %s2432_s6 = smov 112   ;;  %vm467_vm5 = vcmask 36864   ;;  %vm479_vm6 = vcmask 39936   ;;  %vm507_vm7 = vcmask 61440   ;;  %vm580_vm8 = vcmask 127040  }
  0x5f   :  { %s2981_s30 = sld [smem:[#allocation49_spill]]  ;;  %s2433_s0 = smov 104   ;;  %vm653_vm9 = vcmask 192640   ;;  %vm726_vm10 = vcmask 258240   ;;  %vm763_vm11 = vcmask 258048  }
  0x60   :  { %s2982_s9 = sld [smem:[#allocation48_spill]]  ;;  %s2434_s18 = smov 120  }
  0x61   :  { %s2983_s3 = sld [smem:[#allocation53_spill]]  ;;  %s2435_s25 = smov 16  }
  0x62   :  { %v319_v1 = vld [vmem:[%s2978_s11 + $0x8] sm:$0xff]  ;;  %v318_v2 = vld [vmem:[%s2978_s11] sm:$0xff]  ;;  %s2984_s19 = sld [smem:[#allocation52_spill]]  ;;  %s1763_s7 = sshll.u32 %s2952_s27, 4  ;;  %s1764_s7 = int_to_ptr.hbm [resolvable:$true] %s1763_s7 }
  0x63   :  { %342 = vmatpush.msra.mxu1 %v319_v1  ;;  %v386_v4 = vld [vmem:[%s2979_s13 + $0x18] sm:$0xff]  ;;  %v385_v8 = vld [vmem:[%s2979_s13 + $0x10] sm:$0xff]  ;;  %v384_v11 = vld [vmem:[%s2979_s13 + $0x8] sm:$0xff]  ;;  %s2453_s23 = smov [#allocation33]   ;;  %s1774_s26 = sshll.u32 %s2953_s28, 4  ;;  %s1775_s26 = int_to_ptr.hbm [resolvable:$true] %s1774_s26 }
  0x64   :  { %v414_v5 = vld [vmem:[%s2980_s16 + $0x18] sm:$0xff]  ;;  %403 = vmatpush.msra.mxu2 %v386_v4  ;;  %v413_v9 = vld [vmem:[%s2980_s16 + $0x10] sm:$0xff]  ;;  %v412_v12 = vld [vmem:[%s2980_s16 + $0x8] sm:$0xff]  ;;  %s1772_s11 = sshll.u32 %s2453_s23, 4  ;;  %s1773_s11 = int_to_ptr.vmem [resolvable:$true] %s1772_s11 }
  0x65   :  { %v354_v6 = vld [vmem:[%s2981_s30 + $0x18] sm:$0xff]  ;;  %431 = vmatpush.msra.mxu3 %v414_v5  ;;  %343 = vmatpush.msra.mxu1 %v318_v2  ;;  %v353_v7 = vld [vmem:[%s2981_s30 + $0x10] sm:$0xff]  ;;  %v352_v10 = vld [vmem:[%s2981_s30 + $0x8] sm:$0xff] }
  0x66   :  { %1799 = vmatmul.msk.f32.vlgmr.msra.gmra.mxu1 %vm324_vm0, %v317_v3  ;;  %404 = vmatpush.msra.mxu2 %v385_v8  ;;  %v351_v13 = vld [vmem:[%s2981_s30] sm:$0xff]  ;;  %vm845_vm0 = vcmask 523264  }
  0x67   :  { %375 = vmatpush.msrb.mxu1 %v354_v6  ;;  %432 = vmatpush.msra.mxu3 %v413_v9  ;;  %v383_v14 = vld [vmem:[%s2979_s13] sm:$0xff]  ;;  %s2439_s13 = smov 96  }
  0x68   :  { %405 = vmatpush.msra.mxu2 %v384_v11  ;;  %v411_v15 = vld [vmem:[%s2980_s16] sm:$0xff] }
  0x69   :  { %376 = vmatpush.msrb.mxu1 %v353_v7  ;;  %433 = vmatpush.msra.mxu3 %v412_v12  ;;  %v1905_v16 = vld [vmem:[%s2982_s9] ss:$0 sm:$0xff]  ;;  %s2438_s9 = smov 64  }
  0x6a   :  { %406 = vmatpush.msra.mxu2 %v383_v14  ;;  %v1907_v21 = vld [vmem:[%s2983_s3] ss:$0 sm:$0xff] }
  0x6b   :  { %377 = vmatpush.msrb.mxu1 %v352_v10  ;;  %434 = vmatpush.msra.mxu3 %v411_v15  ;;  %v1906_v26 = vld [vmem:[%s2984_s19] ss:$0 sm:$0xff] }
  0x6d   :  { %378 = vmatpush.msrb.mxu1 %v351_v13 }
  0xe3   :  { %v345_v17 = vpop.f32.mrf.mxu1 }
  0xe4   :  { %v346_v18 = vadd.f32 %v1905_v16, %v345_v17 }
  0xe6   :  { %vm348_vm1 = vcmp.gt.f32.partialorder %v346_v18, 0.0  ;;  %v349_v19 = vmul.f32 0.01, %v346_v18 }
  0xe8   :  { %v2708_v20 = vsel %vm348_vm1, %v346_v18, %v349_v19 }
  0xe9   :  { %1800 = vmatmul.msk.f32.vlgmr.msrb.gmra.mxu1 %vm359_vm2, %v2708_v20  ;;  %1801 = vmatmul.msk.f32.vlgmr.msra.gmra.mxu2 %vm359_vm2, %v2708_v20 }
  0xea   :  { %1802 = vmatmul.msk.f32.vlgmr.msra.gmra.mxu3 %vm359_vm2, %v2708_v20 }
 0x166   :  { %v380_v28 = vpop.f32.mrf.mxu1 }
 0x167   :  { %v381_v29 = vadd.f32 %v1906_v26, %v380_v28  ;;  %v730_v26 = vld [vmem:[#allocation11 + $0x8] sm:$0xff] }
 0x16c   :  { %v408_v23 = vpop.f32.mrf.mxu2 }
 0x16d   :  { %v409_v24 = vadd.f32 %v1907_v21, %v408_v23  ;;  %v436_v25 = vpop.f32.mrf.mxu3 }
 0x16e   :  { %v2722_v27 = vadd.f32 %v1908_v22, %v436_v25  ;;  %v731_v25 = vld [vmem:[#allocation11 + $0x10] sm:$0xff] }
 0x16f   :  { %584 = vrot.lane.b32.xlu2 %v409_v24, %s2432_s6  ;;  %657 = vrot.lane.b32.xlu1 %v409_v24, %s2433_s0 }
 0x170   :  { %1805 = vmatpush.msk.msra.mxu1 %vm483_vm3, %v2722_v27  ;;  %511 = vrot.lane.b32.xlu0 %v409_v24, %s2434_s18 }
 0x171   :  { %1803 = vmatpush.xpose.msk.msra.mxu0 %vm439_vm4, %v409_v24  ;;  %v732_v24 = vld [vmem:[#allocation11 + $0x18] sm:$0xff] }
 0x174   :  { %1804 = vmatmul.msk.f32.vlgmr.msra.gmra.mxu0 %vm439_vm4, %v381_v29 }
 0x177   :  { %582 = vrot.lane.b32.xlu2 %v381_v29, %s2432_s6  ;;  %655 = vrot.lane.b32.xlu1 %v381_v29, %s2433_s0 }
 0x178   :  { %509 = vrot.lane.b32.xlu0 %v381_v29, %s2434_s18 }
 0x1c9   :  { %v585_v30 = vpop.permute.xlu2 %584 }
 0x1ca   :  { %1811 = vmatpush.xpose.msk.msrb.mxu0 %vm439_vm4, %v585_v30 }
 0x1ce   :  { %752 = vmatpush.msra.mxu0 %v732_v24 }
 0x1d0   :  { %753 = vmatpush.msra.mxu0 %v731_v25 }
 0x1d1   :  { %v583_v31 = vpop.permute.xlu2 %582 }
 0x1d2   :  { %1812 = vmatmul.msk.f32.vlgmr.msrb.gmra.mxu0 %vm439_vm4, %v583_v31 }
 0x1d3   :  { %754 = vmatpush.msra.mxu0 %v730_v26 }
 0x1e1   :  { %v658_v32 = vpop.permute.xlu1 %657 }
 0x1e2   :  { %v512_v33 = vpop.permute.xlu0 %511 }
 0x1e3   :  { %1807 = vmatpush.xpose.msk.msrb.mxu2 %vm439_vm4, %v512_v33 }
 0x1e7   :  { %1815 = vmatpush.xpose.msk.msra.mxu2 %vm439_vm4, %v658_v32  ;;  %v1909_v32 = vld [vmem:[#allocation12] ss:$0 sm:$0xff] }
 0x1e9   :  { %v656_v36 = vpop.permute.xlu1 %655 }
 0x1ea   :  { %v510_v34 = vpop.permute.xlu0 %509 }
 0x1eb   :  { %1808 = vmatmul.msk.f32.vlgmr.msrb.gmra.mxu2 %vm439_vm4, %v510_v34 }
 0x1f1   :  { %v463_v35 = vpop.f32.mrf.mxu0 }
 0x1f2   :  { %v466_v37 = vmul.f32 0.35355338, %v463_v35 }
 0x1f3   :  { %1816 = vmatmul.msk.f32.vlgmr.msra.gmra.mxu2 %vm439_vm4, %v656_v36 }
 0x1f4   :  { %v468_v38 = vsel %vm467_vm5, %v466_v37, -inf }
 0x1f5   :  { %469 = vmax.xlane.f32.xlu1 %v468_v38 }
 0x24f   :  { %v607_v50 = vpop.f32.mrf.mxu0 }
 0x250   :  { %v610_v51 = vmul.f32 0.35355338, %v607_v50  ;;  %v802_v50 = vld [vmem:[#allocation17 + $0x8] sm:$0xff] }
 0x252   :  { %v611_v52 = vsel %vm467_vm5, %v610_v51, -inf }
 0x268   :  { %v470_v39 = vpop.xlane.xlu1 %469 }
 0x269   :  { %v471_v40 = vsub.f32 %v466_v37, %v470_v39  ;;  %v2436_v37 = vmov 32.0  }
 0x26b   :  { %v472_v41 = vmul.f32 1.442695, %v471_v40 }
 0x26d   :  { %1918 = vpow2.f32 %v472_v41 }
 0x26e   :  { %v534_v42 = vpop.f32.mrf.mxu2 }
 0x26f   :  { %v537_v43 = vmul.f32 0.35355338, %v534_v42 }
 0x271   :  { %v538_v44 = vsel %vm467_vm5, %v537_v43, -inf }
 0x272   :  { %539 = vmax.xlane.f32.xlu0 %v538_v44 }
 0x273   :  { %v1919_v45 = vpop.eup %1918 }
 0x274   :  { %v474_v46 = vsel %vm467_vm5, %v1919_v45, 0.0 }
 0x275   :  { %475 = vadd.xlane.f32.xlu1 %v474_v46 }
 0x276   :  { %v680_v47 = vpop.f32.mrf.mxu2 }
 0x277   :  { %v683_v48 = vmul.f32 0.35355338, %v680_v47 }
 0x279   :  { %v684_v49 = vsel %vm467_vm5, %v683_v48, -inf }
 0x27a   :  { %685 = vmax.xlane.f32.xlu2 %v684_v49  ;;  %v803_v49 = vld [vmem:[#allocation17 + $0x10] sm:$0xff] }
 0x282   :  { %612 = vmax.xlane.f32.xlu2 %v611_v52  ;;  %v840_v52 = vld [vmem:[%s2940_s15 + $0x38] sm:$0xff] }
 0x283   :  { %857 = vmatpush.msrb.mxu2 %v840_v52  ;;  %v983_v52 = vld [vmem:[#allocation24 + $0x138] sm:$0xff] }
 0x2e5   :  { %v540_v53 = vpop.xlane.xlu0 %539 }
 0x2e6   :  { %v541_v54 = vsub.f32 %v537_v43, %v540_v53  ;;  %v839_v53 = vld [vmem:[%s2940_s15 + $0x30] sm:$0xff] }
 0x2e7   :  { %858 = vmatpush.msrb.mxu2 %v839_v53  ;;  %v984_v53 = vld [vmem:[#allocation24 + $0x140] sm:$0xff] }
 0x2e8   :  { %v542_v55 = vmul.f32 1.442695, %v541_v54  ;;  %v476_v56 = vpop.xlane.xlu1 %475  ;;  %v838_v54 = vld [vmem:[%s2940_s15 + $0x28] sm:$0xff] }
 0x2e9   :  { %1920 = vrcp.f32 %v476_v56  ;;  %859 = vmatpush.msrb.mxu2 %v838_v54  ;;  %v985_v54 = vld [vmem:[#allocation24 + $0x148] sm:$0xff] }
 0x2ea   :  { %1922 = vpow2.f32 %v542_v55 }
 0x2ed   :  { %v686_v57 = vpop.xlane.xlu2 %685 }
 0x2ee   :  { %v687_v58 = vsub.f32 %v683_v48, %v686_v57  ;;  %v804_v48 = vld [vmem:[#allocation17 + $0x18] sm:$0xff]  ;;  %v837_v57 = vld [vmem:[%s2940_s15 + $0x20] sm:$0xff] }
 0x2ef   :  { %v1921_v59 = vpop.eup %1920  ;;  %860 = vmatpush.msrb.mxu2 %v837_v57  ;;  %v982_v57 = vld [vmem:[#allocation24 + $0x130] sm:$0xff] }
 0x2f0   :  { %v1923_v60 = vpop.eup %1922  ;;  %v478_v61 = vmul.f32 %v1921_v59, %v1919_v45  ;;  %v688_v62 = vmul.f32 1.442695, %v687_v58  ;;  %v836_v59 = vld [vmem:[%s2940_s15 + $0x18] sm:$0xff] }
 0x2f1   :  { %v544_v63 = vsel %vm467_vm5, %v1923_v60, 0.0  ;;  %861 = vmatpush.msrb.mxu2 %v836_v59  ;;  %v978_v59 = vld [vmem:[#allocation24 + $0x110] sm:$0xff] }
 0x2f2   :  { %1924 = vpow2.f32 %v688_v62  ;;  %1806 = vmatmul.msk.f32.vlgmr.msra.gmra.mxu1 %vm479_vm6, %v478_v61  ;;  %545 = vadd.xlane.f32.xlu0 %v544_v63 }
 0x2f5   :  { %v613_v0 = vpop.xlane.xlu2 %612 }
 0x2f6   :  { %v614_v1 = vsub.f32 %v610_v51, %v613_v0  ;;  %v801_v51 = vld [vmem:[#allocation17] sm:$0xff] }
 0x2f8   :  { %v1925_v2 = vpop.eup %1924  ;;  %v615_v3 = vmul.f32 1.442695, %v614_v1 }
 0x2f9   :  { %v690_v4 = vsel %vm467_vm5, %v1925_v2, 0.0 }
 0x2fa   :  { %1926 = vpow2.f32 %v615_v3  ;;  %691 = vadd.xlane.f32.xlu2 %v690_v4 }
 0x300   :  { %v1927_v5 = vpop.eup %1926 }
 0x301   :  { %v617_v6 = vsel %vm467_vm5, %v1927_v5, 0.0 }
 0x302   :  { %618 = vadd.xlane.f32.xlu1 %v617_v6 }
 0x306   :  { %549 = vrot.lane.b32.xlu0 %v2722_v27, %s2434_s18 }
 0x312   :  { %695 = vrot.lane.b32.xlu2 %v2722_v27, %s2433_s0 }
 0x31b   :  { %622 = vrot.lane.b32.xlu1 %v2722_v27, %s2432_s6  ;;  %v729_v27 = vld [vmem:[#allocation11] sm:$0xff] }
 0x31c   :  { %755 = vmatpush.msra.mxu0 %v729_v27 }
 0x365   :  { %v546_v7 = vpop.xlane.xlu0 %545 }
 0x366   :  { %1928 = vrcp.f32 %v546_v7 }
 0x36c   :  { %v1929_v10 = vpop.eup %1928 }
 0x36d   :  { %v692_v9 = vpop.xlane.xlu2 %691  ;;  %v548_v12 = vmul.f32 %v1929_v10, %v1923_v60  ;;  %v833_v10 = vld [vmem:[%s2940_s15] sm:$0xff] }
 0x36e   :  { %1930 = vrcp.f32 %v692_v9  ;;  %v834_v9 = vld [vmem:[%s2940_s15 + $0x8] sm:$0xff] }
 0x36f   :  { %v504_v8 = vpop.f32.mrf.mxu1 }
 0x370   :  { %508 = vst.msk [vmem:[#allocation2] sm:$0x1f] %vm507_vm7, %v504_v8  ;;  %v835_v8 = vld [vmem:[%s2940_s15 + $0x10] sm:$0xff]  ;;  %s2437_s15 = smov 32  }
 0x371   :  { %862 = vmatpush.msrb.mxu2 %v835_v8  ;;  %v967_v8 = vld [vmem:[#allocation24 + $0xb8] sm:$0xff] }
 0x373   :  { %863 = vmatpush.msrb.mxu2 %v834_v9  ;;  %v962_v9 = vld [vmem:[#allocation24 + $0x90] sm:$0xff] }
 0x374   :  { %v1931_v14 = vpop.eup %1930 }
 0x375   :  { %v696_v13 = vpop.permute.xlu2 %695  ;;  %v694_v15 = vmul.f32 %v1931_v14, %v1925_v2  ;;  %v619_v16 = vpop.xlane.xlu1 %618  ;;  %v1910_v2 = vld [vmem:[#allocation14] ss:$0 sm:$0xff]  ;;  %864 = vmatpush.msrb.mxu2 %v833_v10  ;;  %v963_v10 = vld [vmem:[#allocation24 + $0x98] sm:$0xff] }
 0x376   :  { %1932 = vrcp.f32 %v619_v16 }
 0x377   :  { %1934 = vrcp.f32 %v2436_v37  ;;  %v1915_v37 = vld [vmem:[#allocation23] ss:$0 sm:$0xff] }
 0x378   :  { %v550_v11 = vpop.permute.xlu0 %549 }
 0x379   :  { %1809 = vmatpush.msk.msrb.mxu3 %vm483_vm3, %v550_v11  ;;  %v1912_v11 = vld [vmem:[#allocation18] ss:$0 sm:$0xff] }
 0x37a   :  { %1810 = vmatmul.msk.f32.vlgmr.msrb.gmra.mxu3 %vm479_vm6, %v548_v12 }
 0x37b   :  { %1817 = vmatpush.msk.msra.mxu3 %vm483_vm3, %v696_v13 }
 0x37c   :  { %v1933_v17 = vpop.eup %1932 }
 0x37d   :  { %v621_v18 = vmul.f32 %v1933_v17, %v1927_v5  ;;  %v1935_v38 = vpop.eup %1934  ;;  %v1911_v5 = vld [vmem:[#allocation15] ss:$0 sm:$0xff] }
 0x37e   :  { %v768_v39 = vmul.f32 32.0, %v1935_v38  ;;  %vm772_vm12 = vweird.f32 %v1935_v38 }
 0x380   :  { %v769_v40 = vsub.f32 1.0, %v768_v39  ;;  %v902_v39 = vlaneseq }
 0x382   :  { %1818 = vmatmul.msk.f32.vlgmr.msra.gmra.mxu3 %vm479_vm6, %v694_v15  ;;  %v770_v41 = vmul.f32 %v1935_v38, %v769_v40  ;;  %v1913_v15 = vld [vmem:[#allocation20] ss:$0 sm:$0xff]  ;;  %vm2801_vm5 = vcmp.lt.s32.totalorder %v902_v39, 32  ;;  %vm915_vm7 = vcmp.lt.s32.totalorder %v902_v39, 64 }
 0x384   :  { %v771_v42 = vadd.f32 %v1935_v38, %v770_v41 }
 0x386   :  { %v2766_v43 = vsel %vm772_vm12, %v1935_v38, %v771_v42  ;;  %vm934_vm12 = vcmp.ge.s32.totalorder %v902_v39, 96 }
 0x38d   :  { %v623_v19 = vpop.permute.xlu1 %622 }
 0x38e   :  { %1813 = vmatpush.msk.msrb.mxu1 %vm483_vm3, %v623_v19 }
 0x38f   :  { %1814 = vmatmul.msk.f32.vlgmr.msrb.gmra.mxu1 %vm479_vm6, %v621_v18  ;;  %vm2813_vm6 = vcmp.ge.s32.totalorder %v902_v39, 32 }
 0x390   :  { %824 = vmatpush.msra.mxu1 %v804_v48  ;;  %v991_v48 = vld [vmem:[#allocation24 + $0x178] sm:$0xff] }
 0x391   :  { %1090 = vmatpush.msra.mxu2 %v991_v48  ;;  %v997_v48 = vld [vmem:[#allocation24 + $0x1a8] sm:$0xff] }
 0x392   :  { %825 = vmatpush.msra.mxu1 %v803_v49  ;;  %v986_v49 = vld [vmem:[#allocation24 + $0x150] sm:$0xff] }
 0x394   :  { %826 = vmatpush.msra.mxu1 %v802_v50  ;;  %v987_v50 = vld [vmem:[#allocation24 + $0x158] sm:$0xff] }
 0x396   :  { %827 = vmatpush.msra.mxu1 %v801_v51  ;;  %v988_v51 = vld [vmem:[#allocation24 + $0x160] sm:$0xff] }
 0x397   :  { %1091 = vmatpush.msra.mxu2 %v988_v51  ;;  %v1179_v51 = vld [vmem:[#allocation27 + $0x10] sm:$0xff] }
 0x399   :  { %1092 = vmatpush.msra.mxu2 %v985_v54  ;;  %v1176_v54 = vld [vmem:[#allocation26] sm:$0xff] }
 0x39b   :  { %1093 = vmatpush.msra.mxu2 %v982_v57 }
 0x3fd   :  { %v573_v21 = vpop.f32.mrf.mxu3 }
 0x3fe   :  { %577 = vrot.lane.b32.xlu0 %v573_v21, %s2422_s29 }
 0x405   :  { %v719_v22 = vpop.f32.mrf.mxu3 }
 0x406   :  { %723 = vrot.lane.b32.xlu2 %v719_v22, %s2419_s5 }
 0x40c   :  { %v646_v23 = vpop.f32.mrf.mxu1 }
 0x40d   :  { %650 = vrot.lane.b32.xlu0 %v646_v23, %s2435_s25 }
 0x460   :  { %v724_v30 = vpop.permute.xlu2 %723 }
 0x470   :  { %v578_v28 = vpop.permute.xlu0 %577 }
 0x471   :  { %581 = vst.msk [vmem:[#allocation2] sm:$0x1f] %vm580_vm8, %v578_v28  ;;  %vm924_vm8 = vcmp.ge.s32.totalorder %v902_v39, 64 }
 0x47f   :  { %v651_v29 = vpop.permute.xlu0 %650 }
 0x480   :  { %654 = vst.msk [vmem:[#allocation2] sm:$0x1f] %vm653_vm9, %v651_v29  ;;  %vm925_vm9 = vcmp.lt.s32.totalorder %v902_v39, 96 }
 0x481   :  { %727 = vst.msk [vmem:[#allocation2] sm:$0x1f] %vm726_vm10, %v724_v30  ;;  %vm916_vm10 = vmand %vm2813_vm6, %vm915_vm7 }
 0x488   :  { %v728_v31 = vld [vmem:[#allocation2] sm:$0x1f] }
 0x489   :  { %1819 = vmatmul.msk.f32.vlgmr.msra.gmra.mxu0 %vm359_vm2, %v728_v31 }
 0x506   :  { %v757_v33 = vpop.f32.mrf.mxu0 }
 0x507   :  { %v758_v34 = vadd.f32 %v1909_v32, %v757_v33 }
 0x509   :  { %v760_v35 = vadd.f32 %v758_v34, %v2708_v20 }
 0x50b   :  { %v764_v36 = vsel %vm763_vm11, %v760_v35, 0.0 }
 0x50c   :  { %765 = vadd.xlane.f32.xlu1 %v764_v36 }
 0x57f   :  { %v766_v44 = vpop.xlane.xlu1 %765 }
 0x580   :  { %v774_v45 = vmul.f32 %v2766_v43, %v766_v44 }
 0x582   :  { %v775_v46 = vsub.f32 %v760_v35, %v774_v45  ;;  %v1914_v35 = vld [vmem:[#allocation21] ss:$0 sm:$0xff] }
 0x584   :  { %v776_v47 = vmul.f32 %v775_v46, %v775_v46 }
 0x586   :  { %v777_v20 = vsel %vm763_vm11, %v776_v47, 0.0  ;;  %v989_v47 = vld [vmem:[#allocation24 + $0x168] sm:$0xff] }
 0x587   :  { %778 = vadd.xlane.f32.xlu0 %v777_v20  ;;  %v990_v20 = vld [vmem:[#allocation24 + $0x170] sm:$0xff]  ;;  %1010 = vmatpush.msrb.mxu3 %v989_v47  ;;  %v1003_v47 = vld [vmem:[#allocation24 + $0x1d8] sm:$0xff] }
 0x588   :  { %1050 = vmatpush.msrb.mxu1 %v990_v20  ;;  %v1000_v20 = vld [vmem:[#allocation24 + $0x1c0] sm:$0xff] }
 0x589   :  { %1011 = vmatpush.msrb.mxu3 %v986_v49  ;;  %v994_v49 = vld [vmem:[#allocation24 + $0x190] sm:$0xff] }
 0x58a   :  { %1051 = vmatpush.msrb.mxu1 %v987_v50  ;;  %v1180_v50 = vld [vmem:[#allocation27 + $0x18] sm:$0xff] }
 0x58b   :  { %1012 = vmatpush.msrb.mxu3 %v983_v52  ;;  %v1178_v52 = vld [vmem:[#allocation27 + $0x8] sm:$0xff] }
 0x58c   :  { %1052 = vmatpush.msrb.mxu1 %v984_v53  ;;  %v1177_v53 = vld [vmem:[#allocation27] sm:$0xff] }
 0x5fa   :  { %v779_v55 = vpop.xlane.xlu0 %778 }
 0x5fb   :  { %v780_v56 = vmul.f32 %v779_v55, %v2766_v43  ;;  %v980_v55 = vld [vmem:[#allocation24 + $0x120] sm:$0xff] }
 0x5fc   :  { %1013 = vmatpush.msrb.mxu3 %v980_v55 }
 0x5fd   :  { %v781_v58 = vadd.f32 1e-05, %v780_v56  ;;  %v981_v56 = vld [vmem:[#allocation24 + $0x128] sm:$0xff] }
 0x5fe   :  { %1053 = vmatpush.msrb.mxu1 %v981_v56 }
 0x5ff   :  { %1936 = vrsqrt.f32 %v781_v58  ;;  %vm788_vm14 = vweird.f32 %v781_v58 }
 0x600   :  { %1054 = vmatpush.msrb.mxu1 %v978_v59 }
 0x605   :  { %v1937_v60 = vpop.eup %1936 }
 0x606   :  { %v783_v61 = vmul.f32 %v1937_v60, %v781_v58  ;;  %vm789_vm13 = vweird.f32 %v1937_v60  ;;  %v977_v58 = vld [vmem:[#allocation24 + $0x108] sm:$0xff] }
 0x607   :  { %vm790_vm15 = vmor %vm788_vm14, %vm789_vm13  ;;  %1014 = vmatpush.msrb.mxu3 %v977_v58  ;;  %vm935_vm13 = vcmp.lt.s32.totalorder %v902_v39, 128 }
 0x608   :  { %v784_v62 = vmul.f32 %v1937_v60, %v783_v61  ;;  %v974_v61 = vld [vmem:[#allocation24 + $0xf0] sm:$0xff]  ;;  %vm936_vm14 = vmand %vm934_vm12, %vm935_vm13 }
 0x609   :  { %1015 = vmatpush.msrb.mxu3 %v974_v61 }
 0x60a   :  { %v785_v63 = vmul.f32 0.5, %v784_v62  ;;  %v975_v62 = vld [vmem:[#allocation24 + $0xf8] sm:$0xff] }
 0x60b   :  { %1055 = vmatpush.msrb.mxu1 %v975_v62 }
 0x60c   :  { %v786_v0 = vsub.f32 1.5, %v785_v63  ;;  %v976_v63 = vld [vmem:[#allocation24 + $0x100] sm:$0xff] }
 0x60e   :  { %v787_v1 = vmul.f32 %v1937_v60, %v786_v0  ;;  %v971_v0 = vld [vmem:[#allocation24 + $0xd8] sm:$0xff] }
 0x60f   :  { %1016 = vmatpush.msrb.mxu3 %v971_v0 }
 0x610   :  { %v791_v3 = vsel %vm790_vm15, %v1937_v60, %v787_v1  ;;  %v979_v60 = vld [vmem:[#allocation24 + $0x118] sm:$0xff]  ;;  %v972_v1 = vld [vmem:[#allocation24 + $0xe0] sm:$0xff] }
 0x611   :  { %v792_v4 = vmul.f32 %v791_v3, %v775_v46  ;;  %1094 = vmatpush.msra.mxu2 %v979_v60  ;;  %v968_v3 = vld [vmem:[#allocation24 + $0xc0] sm:$0xff]  ;;  %1056 = vmatpush.msrb.mxu1 %v972_v1 }
 0x612   :  { %1017 = vmatpush.msrb.mxu3 %v968_v3 }
 0x613   :  { %v796_v6 = vmul.f32 %v1910_v2, %v792_v4  ;;  %v973_v2 = vld [vmem:[#allocation24 + $0xe8] sm:$0xff]  ;;  %1095 = vmatpush.msra.mxu2 %v976_v63 }
 0x614   :  { %v969_v4 = vld [vmem:[#allocation24 + $0xc8] sm:$0xff] }
 0x615   :  { %v800_v7 = vadd.f32 %v1911_v5, %v796_v6  ;;  %v970_v5 = vld [vmem:[#allocation24 + $0xd0] sm:$0xff]  ;;  %1096 = vmatpush.msra.mxu2 %v973_v2  ;;  %v965_v6 = vld [vmem:[#allocation24 + $0xa8] sm:$0xff]  ;;  %1057 = vmatpush.msrb.mxu1 %v969_v4 }
 0x616   :  { %1018 = vmatpush.msrb.mxu3 %v965_v6  ;;  %v1259_v6 = vld [vmem:[#allocation30 + $0x18] sm:$0xff] }
 0x617   :  { %1820 = vmatmul.msk.f32.vlgmr.msra.gmra.mxu1 %vm359_vm2, %v800_v7  ;;  %1097 = vmatpush.msra.mxu2 %v970_v5 }
 0x618   :  { %1019 = vmatpush.msrb.mxu3 %v962_v9 }
 0x619   :  { %1098 = vmatpush.msra.mxu2 %v967_v8  ;;  %v1916_v8 = vld [vmem:[#allocation29] ss:$0 sm:$0xff] }
 0x694   :  { %v829_v12 = vpop.f32.mrf.mxu1 }
 0x695   :  { %v830_v13 = vadd.f32 %v1912_v11, %v829_v12  ;;  %v964_v11 = vld [vmem:[#allocation24 + $0xa0] sm:$0xff]  ;;  %v959_v12 = vld [vmem:[#allocation24 + $0x78] sm:$0xff] }
 0x696   :  { %1099 = vmatpush.msra.mxu2 %v964_v11  ;;  %1020 = vmatpush.msrb.mxu3 %v959_v12  ;;  %v1289_v11 = vld [vmem:[#allocation30 + $0x30] sm:$0xff] }
 0x697   :  { %v832_v14 = vmax.f32 %v830_v13, 0.0  ;;  %v960_v13 = vld [vmem:[#allocation24 + $0x80] sm:$0xff] }
 0x699   :  { %1821 = vmatmul.msk.f32.vlgmr.msrb.gmra.mxu2 %vm845_vm0, %v832_v14  ;;  %v961_v14 = vld [vmem:[#allocation24 + $0x88] sm:$0xff]  ;;  %vm1139_vm0 = vcmask 253952  }
 0x69a   :  { %1100 = vmatpush.msra.mxu2 %v961_v14  ;;  %v1257_v14 = vld [vmem:[#allocation30 + $0x8] sm:$0xff] }
 0x71c   :  { %v866_v16 = vpop.f32.mrf.mxu2 }
 0x71d   :  { %v867_v17 = vadd.f32 %v1913_v15, %v866_v16  ;;  %v956_v15 = vld [vmem:[#allocation24 + $0x60] sm:$0xff]  ;;  %v957_v16 = vld [vmem:[#allocation24 + $0x68] sm:$0xff] }
 0x71e   :  { %1021 = vmatpush.msrb.mxu3 %v956_v15  ;;  %v1288_v15 = vld [vmem:[#allocation30 + $0x28] sm:$0xff] }
 0x71f   :  { %v869_v18 = vadd.f32 %v867_v17, %v800_v7  ;;  %v966_v7 = vld [vmem:[#allocation24 + $0xb0] sm:$0xff] }
 0x720   :  { %1058 = vmatpush.msrb.mxu1 %v966_v7  ;;  %v958_v17 = vld [vmem:[#allocation24 + $0x70] sm:$0xff]  ;;  %v1290_v7 = vld [vmem:[#allocation30 + $0x38] sm:$0xff] }
 0x721   :  { %v872_v19 = vsel %vm763_vm11, %v869_v18, 0.0  ;;  %1101 = vmatpush.msra.mxu2 %v958_v17  ;;  %v1256_v17 = vld [vmem:[#allocation30] sm:$0xff] }
 0x722   :  { %873 = vadd.xlane.f32.xlu2 %v872_v19  ;;  %1059 = vmatpush.msrb.mxu1 %v963_v10  ;;  %v1001_v19 = vld [vmem:[#allocation24 + $0x1c8] sm:$0xff]  ;;  %v1258_v10 = vld [vmem:[#allocation30 + $0x10] sm:$0xff] }
 0x723   :  { %1042 = vmatpush.msrb.mxu0 %v1001_v19 }
 0x724   :  { %1060 = vmatpush.msrb.mxu1 %v960_v13 }
 0x726   :  { %1061 = vmatpush.msrb.mxu1 %v957_v16 }
 0x795   :  { %v874_v21 = vpop.xlane.xlu2 %873 }
 0x796   :  { %v875_v22 = vmul.f32 %v874_v21, %v2766_v43  ;;  %v954_v21 = vld [vmem:[#allocation24 + $0x50] sm:$0xff] }
 0x797   :  { %1062 = vmatpush.msrb.mxu1 %v954_v21  ;;  %v1350_v21 = vld [vmem:[#allocation30 + $0x78] sm:$0xff] }
 0x798   :  { %v876_v23 = vsub.f32 %v869_v18, %v875_v22  ;;  %v953_v18 = vld [vmem:[#allocation24 + $0x48] sm:$0xff]  ;;  %v955_v22 = vld [vmem:[#allocation24 + $0x58] sm:$0xff] }
 0x799   :  { %1022 = vmatpush.msrb.mxu3 %v953_v18  ;;  %1102 = vmatpush.msra.mxu2 %v955_v22  ;;  %v1287_v18 = vld [vmem:[#allocation30 + $0x20] sm:$0xff]  ;;  %v1380_v22 = vld [vmem:[#allocation30 + $0x98] sm:$0xff] }
 0x79a   :  { %v877_v24 = vmul.f32 %v876_v23, %v876_v23 }
 0x79c   :  { %v878_v25 = vsel %vm763_vm11, %v877_v24, 0.0  ;;  %v998_v24 = vld [vmem:[#allocation24 + $0x1b0] sm:$0xff]  ;;  %vm926_vm11 = vmand %vm924_vm8, %vm925_vm9  ;;  %vm1240_vm8 = vcmask 80896  }
 0x79d   :  { %879 = vadd.xlane.f32.xlu1 %v878_v25  ;;  %v951_v25 = vld [vmem:[#allocation24 + $0x38] sm:$0xff]  ;;  %1043 = vmatpush.msrb.mxu0 %v998_v24 }
 0x79e   :  { %1063 = vmatpush.msrb.mxu1 %v951_v25  ;;  %v1349_v24 = vld [vmem:[#allocation30 + $0x70] sm:$0xff] }
 0x79f   :  { %v1379_v25 = vld [vmem:[#allocation30 + $0x90] sm:$0xff] }
 0x810   :  { %v880_v26 = vpop.xlane.xlu1 %879 }
 0x811   :  { %v881_v27 = vmul.f32 %v880_v26, %v2766_v43  ;;  %v952_v26 = vld [vmem:[#allocation24 + $0x40] sm:$0xff] }
 0x812   :  { %1103 = vmatpush.msra.mxu2 %v952_v26  ;;  %v1409_v26 = vld [vmem:[#allocation30 + $0xb0] sm:$0xff] }
 0x813   :  { %v882_v28 = vadd.f32 1e-05, %v881_v27  ;;  %v947_v27 = vld [vmem:[#allocation24 + $0x18] sm:$0xff] }
 0x815   :  { %1938 = vrsqrt.f32 %v882_v28  ;;  %vm889_vm3 = vweird.f32 %v882_v28 }
 0x81b   :  { %v1939_v29 = vpop.eup %1938 }
 0x81c   :  { %v884_v30 = vmul.f32 %v1939_v29, %v882_v28  ;;  %vm890_vm1 = vweird.f32 %v1939_v29  ;;  %v995_v28 = vld [vmem:[#allocation24 + $0x198] sm:$0xff] }
 0x81d   :  { %vm891_vm4 = vmor %vm889_vm3, %vm890_vm1  ;;  %1044 = vmatpush.msrb.mxu0 %v995_v28  ;;  %v1348_v28 = vld [vmem:[#allocation30 + $0x68] sm:$0xff] }
 0x81e   :  { %v885_v31 = vmul.f32 %v1939_v29, %v884_v30  ;;  %v949_v30 = vld [vmem:[#allocation24 + $0x28] sm:$0xff] }
 0x81f   :  { %1104 = vmatpush.msra.mxu2 %v949_v30  ;;  %v1408_v30 = vld [vmem:[#allocation30 + $0xa8] sm:$0xff] }
 0x820   :  { %v886_v32 = vmul.f32 0.5, %v885_v31  ;;  %v992_v31 = vld [vmem:[#allocation24 + $0x180] sm:$0xff] }
 0x821   :  { %1045 = vmatpush.msrb.mxu0 %v992_v31  ;;  %v1347_v31 = vld [vmem:[#allocation30 + $0x60] sm:$0xff] }
 0x822   :  { %v887_v33 = vsub.f32 1.5, %v886_v32  ;;  %v944_v32 = vld [vmem:[#allocation24] sm:$0xff] }
 0x824   :  { %v888_v34 = vmul.f32 %v1939_v29, %v887_v33  ;;  %v945_v33 = vld [vmem:[#allocation24 + $0x8] sm:$0xff] }
 0x826   :  { %v892_v36 = vsel %vm891_vm4, %v1939_v29, %v888_v34  ;;  %v948_v29 = vld [vmem:[#allocation24 + $0x20] sm:$0xff]  ;;  %v946_v34 = vld [vmem:[#allocation24 + $0x10] sm:$0xff] }
 0x827   :  { %v893_v38 = vmul.f32 %v892_v36, %v876_v23  ;;  %v950_v23 = vld [vmem:[#allocation24 + $0x30] sm:$0xff]  ;;  %1064 = vmatpush.msrb.mxu1 %v948_v29  ;;  %1105 = vmatpush.msra.mxu2 %v946_v34  ;;  %v1470_v34 = vld [vmem:[#allocation30 + $0xf8] sm:$0xff] }
 0x828   :  { %1023 = vmatpush.msrb.mxu3 %v950_v23  ;;  %v1002_v36 = vld [vmem:[#allocation24 + $0x1d0] sm:$0xff]  ;;  %v1410_v23 = vld [vmem:[#allocation30 + $0xb8] sm:$0xff] }
 0x829   :  { %v897_v40 = vmul.f32 %v1914_v35, %v893_v38  ;;  %1065 = vmatpush.msrb.mxu1 %v945_v33  ;;  %1082 = vmatpush.msra.mxu0 %v1002_v36  ;;  %v996_v38 = vld [vmem:[#allocation24 + $0x1a0] sm:$0xff]  ;;  %v1378_v29 = vld [vmem:[#allocation30 + $0x88] sm:$0xff]  ;;  %v1407_v33 = vld [vmem:[#allocation30 + $0xa0] sm:$0xff] }
 0x82a   :  { %1024 = vmatpush.msrb.mxu3 %v947_v27  ;;  %1423 = vmatpush.msrb.mxu2 %v1410_v23  ;;  %v1500_v35 = vld [vmem:[#allocation30 + $0x118] sm:$0xff] }
 0x82b   :  { %v901_v41 = vadd.f32 %v1915_v37, %v897_v40  ;;  %v999_v37 = vld [vmem:[#allocation24 + $0x1b8] sm:$0xff]  ;;  %1303 = vmatpush.msra.mxu1 %v1290_v7  ;;  %v1530_v36 = vld [vmem:[#allocation30 + $0x138] sm:$0xff] }
 0x82c   :  { %1025 = vmatpush.msrb.mxu3 %v944_v32  ;;  %1083 = vmatpush.msra.mxu0 %v999_v37  ;;  %v1377_v32 = vld [vmem:[#allocation30 + $0x80] sm:$0xff]  ;;  %v1469_v37 = vld [vmem:[#allocation30 + $0xf0] sm:$0xff] }
 0x82d   :  { %908 = vst [vmem:[#allocation1] sm:$0xff] %v901_v41  ;;  %1304 = vmatpush.msra.mxu1 %v1289_v11  ;;  %1424 = vmatpush.msrb.mxu2 %v1409_v26 }
 0x82e   :  { %906 = vst.msk [vmem:[#allocation3] sm:$0x1] %vm2801_vm5, %v901_v41  ;;  %1084 = vmatpush.msra.mxu0 %v996_v38  ;;  %v1499_v38 = vld [vmem:[#allocation30 + $0x110] sm:$0xff] }
 0x82f   :  { %1305 = vmatpush.msra.mxu1 %v1288_v15  ;;  %1425 = vmatpush.msrb.mxu2 %v1408_v30 }
 0x831   :  { %1306 = vmatpush.msra.mxu1 %v1287_v18  ;;  %1426 = vmatpush.msrb.mxu2 %v1407_v33 }
 0x834   :  { %v910_v43 = vld [vmem:[#allocation1 + $0x1] ss:$9 sm:$0xff] }
 0x835   :  { %911 = vrot.lane.b32.xlu0 %v910_v43, %s2437_s15  ;;  %918 = vst [vmem:[#allocation1] sm:$0xff] %v901_v41 }
 0x83c   :  { %v920_v44 = vld [vmem:[#allocation1 + $0x2] ss:$9 sm:$0xff] }
 0x83d   :  { %921 = vrot.lane.b32.xlu2 %v920_v44, %s2438_s9  ;;  %928 = vst [vmem:[#allocation1] sm:$0xff] %v901_v41 }
 0x844   :  { %v930_v45 = vld [vmem:[#allocation1 + $0x3] ss:$9 sm:$0xff] }
 0x845   :  { %931 = vrot.lane.b32.xlu1 %v930_v45, %s2439_s13  ;;  %938 = vst [vmem:[#allocation1] sm:$0xff] %v901_v41  ;;  %v993_v41 = vld [vmem:[#allocation24 + $0x188] sm:$0xff] }
 0x846   :  { %1085 = vmatpush.msra.mxu0 %v993_v41  ;;  %v1468_v41 = vld [vmem:[#allocation30 + $0xe8] sm:$0xff] }
 0x84c   :  { %v940_v46 = vld [vmem:[#allocation1 + $0x4] ss:$9 sm:$0xff] }
 0x84d   :  { %942 = vst.msk [vmem:[#allocation3 + $0x1] sm:$0x1] %vm2801_vm5, %v940_v46  ;;  %vm1607_vm5 = vcmask 254976  }
 0x897   :  { %v922_v42 = vpop.permute.xlu2 %921 }
 0x8a7   :  { %v912_v40 = vpop.permute.xlu0 %911 }
 0x8a8   :  { %917 = vst.msk [vmem:[#allocation3] sm:$0x1] %vm916_vm10, %v912_v40  ;;  %v1529_v40 = vld [vmem:[#allocation30 + $0x130] sm:$0xff] }
 0x8a9   :  { %927 = vst.msk [vmem:[#allocation3] sm:$0x1] %vm926_vm11, %v922_v42  ;;  %v1498_v42 = vld [vmem:[#allocation30 + $0x108] sm:$0xff] }
 0x8b7   :  { %v932_v43 = vpop.permute.xlu1 %931 }
 0x8b8   :  { %937 = vst.msk [vmem:[#allocation3] sm:$0x1] %vm936_vm14, %v932_v43  ;;  %v1528_v43 = vld [vmem:[#allocation30 + $0x128] sm:$0xff] }
 0x8bf   :  { %v943_v44 = vld [vmem:[#allocation3] sm:$0x3] }
 0x8c0   :  { %v1005_v45 = vperm.slane %v943_v44, 0  ;;  %v1006_v46 = vperm.slane %v943_v44, 1  ;;  %v1467_v44 = vld [vmem:[#allocation30 + $0xe0] sm:$0xff] }
 0x8c2   :  { %1026 = vmatmul.f32.vlgmr.msrb.gmra.mxu3 %v1005_v45  ;;  %1822 = vmatmul.msk.f32.vlgmr.msrb.gmra.mxu0 %vm359_vm2, %v1006_v46 }
 0x8c3   :  { %1066 = vmatmul.f32.vlgmr.msrb.gmra.mxu1 %v1005_v45  ;;  %1106 = vmatmul.f32.vlgmr.msra.gmra.mxu2 %v1005_v45  ;;  %v1497_v45 = vld [vmem:[#allocation30 + $0x100] sm:$0xff] }
 0x8c4   :  { %1122 = vmatpush.msrb.mxu0 %v1003_v47  ;;  %1393 = vmatpush.msrb.mxu1 %v1380_v22 }
 0x8c5   :  { %1543 = vmatpush.msra.mxu2 %v1530_v36 }
 0x8c6   :  { %1123 = vmatpush.msrb.mxu0 %v1000_v20  ;;  %1394 = vmatpush.msrb.mxu1 %v1379_v25 }
 0x8c7   :  { %1544 = vmatpush.msra.mxu2 %v1529_v40 }
 0x8c8   :  { %1124 = vmatpush.msrb.mxu0 %v997_v48  ;;  %1395 = vmatpush.msrb.mxu1 %v1378_v29 }
 0x8c9   :  { %1545 = vmatpush.msra.mxu2 %v1528_v43 }
 0x8ca   :  { %1823 = vmatmul.msk.f32.vlgmr.msra.gmra.mxu0 %vm359_vm2, %v1006_v46  ;;  %1396 = vmatpush.msrb.mxu1 %v1377_v32 }
 0x8cb   :  { %1125 = vmatpush.msrb.mxu0 %v994_v49 }
 0x8cd   :  { %1200 = vmatpush.msra.mxu0 %v1180_v50 }
 0x8cf   :  { %1201 = vmatpush.msra.mxu0 %v1179_v51 }
 0x8d1   :  { %1202 = vmatpush.msra.mxu0 %v1178_v52 }
 0x8d2   :  { %1824 = vmatmul.msk.f32.vlgmr.msrb.gmra.mxu0 %vm359_vm2, %v1006_v46  ;;  %v1527_v46 = vld [vmem:[#allocation30 + $0x120] sm:$0xff] }
 0x8d3   :  { %1203 = vmatpush.msra.mxu0 %v1177_v53  ;;  %1546 = vmatpush.msra.mxu2 %v1527_v46 }
 0x8d5   :  { %1272 = vmatpush.msrb.mxu0 %v1259_v6 }
 0x8d7   :  { %1273 = vmatpush.msrb.mxu0 %v1258_v10 }
 0x8d9   :  { %1274 = vmatpush.msrb.mxu0 %v1257_v14 }
 0x8da   :  { %1825 = vmatmul.msk.f32.vlgmr.msra.gmra.mxu0 %vm359_vm2, %v1176_v54  ;;  %v1320_v54 = vld [vmem:[#allocation30 + $0x58] sm:$0xff] }
 0x8db   :  { %1275 = vmatpush.msrb.mxu0 %v1256_v17 }
 0x8dd   :  { %1363 = vmatpush.msra.mxu0 %v1350_v21 }
 0x8df   :  { %1364 = vmatpush.msra.mxu0 %v1349_v24 }
 0x8e1   :  { %1365 = vmatpush.msra.mxu0 %v1348_v28 }
 0x8e3   :  { %1366 = vmatpush.msra.mxu0 %v1347_v31 }
 0x93f   :  { %v1047_v55 = vpop.f32.mrf.mxu0 }
 0x940   :  { %v1067_v58 = vpop.f32.mrf.mxu1 }
 0x945   :  { %v1027_v56 = vpop.f32.mrf.mxu3 }
 0x946   :  { %v1048_v57 = vadd.f32 %v1047_v55, %v1027_v56  ;;  %v1107_v1 = vpop.f32.mrf.mxu2 }
 0x947   :  { %v1087_v59 = vpop.f32.mrf.mxu0 }
 0x948   :  { %vm1130_vm15 = vcmp.gt.f32.partialorder %v1048_v57, 0.0  ;;  %v1133_v60 = vmul.f32 0.01, %v1048_v57  ;;  %v1088_v61 = vadd.f32 %v1087_v59, %v1067_v58  ;;  %v1318_v59 = vld [vmem:[#allocation30 + $0x48] sm:$0xff] }
 0x94a   :  { %vm1131_vm1 = vcmp.gt.f32.partialorder %v1088_v61, 0.0  ;;  %v1134_v62 = vmul.f32 0.01, %v1088_v61  ;;  %v1136_v63 = vsel %vm1130_vm15, %v1048_v57, %v1133_v60  ;;  %v1319_v57 = vld [vmem:[#allocation30 + $0x50] sm:$0xff]  ;;  %v1317_v60 = vld [vmem:[#allocation30 + $0x40] sm:$0xff] }
 0x94b   :  { %1150 = vrot.lane.b32.xlu1 %v1136_v63, %s2437_s15  ;;  %1140 = vst.msk [vmem:[#allocation4] sm:$0x1] %vm1139_vm0, %v1136_v63  ;;  %1146 = vrot.lane.b32.xlu0 %v1136_v63, %s2438_s9 }
 0x94c   :  { %1142 = vrot.lane.b32.xlu2 %v1136_v63, %s2439_s13  ;;  %v1137_v0 = vsel %vm1131_vm1, %v1088_v61, %v1134_v62  ;;  %v1440_v61 = vld [vmem:[#allocation30 + $0xd8] sm:$0xff]  ;;  %v1439_v62 = vld [vmem:[#allocation30 + $0xd0] sm:$0xff]  ;;  %v1438_v63 = vld [vmem:[#allocation30 + $0xc8] sm:$0xff] }
 0x94d   :  { %1154 = vst.msk [vmem:[#allocation4 + $0x4] sm:$0x1] %vm1139_vm0, %v1137_v0 }
 0x94f   :  { %v1127_v2 = vpop.f32.mrf.mxu0 }
 0x950   :  { %v1128_v3 = vadd.f32 %v1127_v2, %v1107_v1 }
 0x952   :  { %v1135_v4 = vmul.f32 0.01, %v1128_v3  ;;  %vm1132_vm3 = vcmp.gt.f32.partialorder %v1128_v3, 0.0 }
 0x953   :  { %1164 = vrot.lane.b32.xlu1 %v1137_v0, %s2437_s15 }
 0x954   :  { %1156 = vrot.lane.b32.xlu2 %v1137_v0, %s2439_s13  ;;  %v1138_v5 = vsel %vm1132_vm3, %v1128_v3, %v1135_v4 }
 0x955   :  { %1168 = vst.msk [vmem:[#allocation4 + $0x8] sm:$0x1] %vm1139_vm0, %v1138_v5  ;;  %1170 = vrot.lane.b32.xlu0 %v1138_v5, %s2439_s13 }
 0x957   :  { %v1205_v9 = vpop.f32.mrf.mxu0 }
 0x958   :  { %v1206_v12 = vadd.f32 %v1916_v8, %v1205_v9 }
 0x95a   :  { %v1209_v16 = vmul.f32 0.01, %v1206_v12  ;;  %vm1208_vm4 = vcmp.gt.f32.partialorder %v1206_v12, 0.0 }
 0x95c   :  { %v2839_v19 = vsel %vm1208_vm4, %v1206_v12, %v1209_v16 }
 0x95d   :  { %1160 = vrot.lane.b32.xlu0 %v1137_v0, %s2438_s9  ;;  %1829 = vmatmul.msk.f32.vlgmr.msrb.gmra.mxu0 %vm359_vm2, %v2839_v19  ;;  %v1437_v0 = vld [vmem:[#allocation30 + $0xc0] sm:$0xff]  ;;  %s2989_s9 = sld [smem:[#allocation59_spill]] }
 0x95e   :  { %1830 = vmatmul.msk.f32.vlgmr.msra.gmra.mxu1 %vm359_vm2, %v2839_v19  ;;  %1834 = vmatmul.msk.f32.vlgmr.msrb.gmra.mxu2 %vm359_vm2, %v2839_v19 }
 0x95f   :  { %1483 = vmatpush.msrb.mxu0 %v1470_v34  ;;  %1513 = vmatpush.msra.mxu1 %v1500_v35 }
 0x961   :  { %1484 = vmatpush.msrb.mxu0 %v1469_v37  ;;  %1514 = vmatpush.msra.mxu1 %v1499_v38 }
 0x963   :  { %1485 = vmatpush.msrb.mxu0 %v1468_v41  ;;  %1515 = vmatpush.msra.mxu1 %v1498_v42 }
 0x965   :  { %1832 = vmatmul.msk.f32.vlgmr.msra.gmra.mxu0 %vm359_vm2, %v2839_v19  ;;  %1516 = vmatpush.msra.mxu1 %v1497_v45 }
 0x966   :  { %1833 = vmatmul.msk.f32.vlgmr.msrb.gmra.mxu1 %vm359_vm2, %v2839_v19  ;;  %1486 = vmatpush.msrb.mxu0 %v1467_v44 }
 0x967   :  { %1838 = vmatmul.msk.f32.vlgmr.msra.gmra.mxu2 %vm359_vm2, %v2839_v19 }
 0x96d   :  { %1836 = vmatmul.msk.f32.vlgmr.msrb.gmra.mxu0 %vm359_vm2, %v2839_v19 }
 0x96e   :  { %1837 = vmatmul.msk.f32.vlgmr.msra.gmra.mxu1 %vm359_vm2, %v2839_v19 }
 0x9a6   :  { %v1143_v13 = vpop.permute.xlu2 %1142 }
 0x9a7   :  { %1145 = vst.msk [vmem:[#allocation4 + $0x1] sm:$0x1] %vm1139_vm0, %v1143_v13 }
 0x9ae   :  { %v1157_v27 = vpop.permute.xlu2 %1156 }
 0x9af   :  { %1159 = vst.msk [vmem:[#allocation4 + $0x5] sm:$0x1] %vm1139_vm0, %v1157_v27 }
 0x9bd   :  { %v1151_v47 = vpop.permute.xlu1 %1150  ;;  %v1147_v20 = vpop.permute.xlu0 %1146 }
 0x9be   :  { %1153 = vst.msk [vmem:[#allocation4 + $0x3] sm:$0x1] %vm1139_vm0, %v1151_v47 }
 0x9bf   :  { %1149 = vst.msk [vmem:[#allocation4 + $0x2] sm:$0x1] %vm1139_vm0, %v1147_v20 }
 0x9c5   :  { %v1165_v48 = vpop.permute.xlu1 %1164 }
 0x9c6   :  { %1167 = vst.msk [vmem:[#allocation4 + $0x7] sm:$0x1] %vm1139_vm0, %v1165_v48 }
 0x9c7   :  { %v1171_v49 = vpop.permute.xlu0 %1170 }
 0x9c8   :  { %1173 = vst.msk [vmem:[#allocation4 + $0x9] sm:$0x1] %vm1139_vm0, %v1171_v49 }
 0x9cf   :  { %v1161_v50 = vpop.permute.xlu0 %1160  ;;  %v2862_v51 = vld [vmem:[#allocation4 + $0x8] sm:$0x3] }
 0x9d0   :  { %1163 = vst.msk [vmem:[#allocation4 + $0x6] sm:$0x1] %vm1139_vm0, %v1161_v50  ;;  %1826 = vmatpush.xpose.msk.msra.mxu3 %vm359_vm2, %v2862_v51  ;;  %v1603_v52 = vmul.f32 %v2862_v51, %v2862_v51 }
 0x9d2   :  { %v1608_v53 = vsel %vm1607_vm5, %v1603_v52, 0.0 }
 0x9d3   :  { %1609 = vadd.xlane.f32.xlu2 %v1608_v53 }
 0x9d7   :  { %v2869_v55 = vld [vmem:[#allocation4] sm:$0xff] }
 0x9d8   :  { %1827 = vmatpush.xpose.msk.msra.mxu3 %vm359_vm2, %v2869_v55  ;;  %v1602_v56 = vmul.f32 %v2869_v55, %v2869_v55 }
 0x9da   :  { %v1604_v58 = vsel %vm359_vm2, %v1602_v56, 0.0  ;;  %v2440_v56 = vmov 2  }
 0x9db   :  { %1605 = vadd.xlane.f32.xlu0 %v1604_v58  ;;  %1828 = vmatmul.msk.f32.vlgmr.msra.gmra.mxu3 %vm359_vm2, %v2839_v19 }
 0x9dc   :  { %1333 = vmatpush.msrb.mxu3 %v1320_v54  ;;  %1896 = vset.pattern.permute.xlu2 %v2440_v56 }
 0x9de   :  { %1334 = vmatpush.msrb.mxu3 %v1319_v57  ;;  %v2441_v57 = vmov 1  }
 0x9df   :  { %1895 = vset.pattern.permute.xlu1 %v2441_v57 }
 0x9e0   :  { %1335 = vmatpush.msrb.mxu3 %v1318_v59 }
 0x9e2   :  { %1336 = vmatpush.msrb.mxu3 %v1317_v60 }
 0x9e3   :  { %1831 = vmatmul.msk.f32.vlgmr.msrb.gmra.mxu3 %vm359_vm2, %v2839_v19 }
 0x9e4   :  { %1453 = vmatpush.msra.mxu3 %v1440_v61  ;;  %v2443_v61 = vmov 4  }
 0x9e6   :  { %1454 = vmatpush.msra.mxu3 %v1439_v62  ;;  %v2444_v62 = vmov 3  }
 0x9e8   :  { %1455 = vmatpush.msra.mxu3 %v1438_v63  ;;  %v2445_v63 = vmov 7  }
 0x9ea   :  { %1456 = vmatpush.msra.mxu3 %v1437_v0  ;;  %v2894_v0 = vpop.f32.mrf.mxu0 }
 0x9eb   :  { %1835 = vmatmul.msk.f32.vlgmr.msra.gmra.mxu3 %vm359_vm2, %v2839_v19 }
 0xa46   :  { %v1610_v1 = vpop.xlane.xlu2 %1609 }
 0xa47   :  { %1940 = vrsqrt.f32 %v1610_v1  ;;  %vm1630_vm6 = vcmp.eq.f32.partialorder %v1610_v1, inf  ;;  %v1633_v13 = vand.u32 2147483648, %v1610_v1  ;;  %vm1632_vm7 = vcmp.eq.f32.partialorder %v1610_v1, 0.0 }
 0xa4d   :  { %v1941_v2 = vpop.eup %1940 }
 0xa4e   :  { %v1624_v3 = vmul.f32 %v1941_v2, %v1610_v1  ;;  %v1606_v4 = vpop.xlane.xlu0 %1605 }
 0xa4f   :  { %1942 = vrsqrt.f32 %v1606_v4  ;;  %vm1618_vm9 = vcmp.eq.f32.partialorder %v1606_v4, inf  ;;  %v1621_v24 = vand.u32 2147483648, %v1606_v4  ;;  %vm1620_vm10 = vcmp.eq.f32.partialorder %v1606_v4, 0.0 }
 0xa50   :  { %v1625_v5 = vmul.f32 %v1941_v2, %v1624_v3  ;;  %v2448_v3 = vmov 9  }
 0xa52   :  { %v1626_v6 = vmul.f32 0.5, %v1625_v5  ;;  %v2449_v5 = vmov 8  }
 0xa54   :  { %v1627_v7 = vsub.f32 1.5, %v1626_v6 }
 0xa55   :  { %v1943_v8 = vpop.eup %1942 }
 0xa56   :  { %v1628_v9 = vmul.f32 %v1941_v2, %v1627_v7  ;;  %v1612_v10 = vmul.f32 %v1943_v8, %v1606_v4  ;;  %v2447_v2 = vmov 5  }
 0xa58   :  { %v1629_v11 = vmul.f32 %v1628_v9, %v1610_v1  ;;  %v1613_v12 = vmul.f32 %v1943_v8, %v1612_v10  ;;  %v1697_v9 = vshrl.u32 %v902_v39, 7 }
 0xa5a   :  { %v1631_v14 = vsel %vm1630_vm6, %v1610_v1, %v1629_v11  ;;  %v1614_v15 = vmul.f32 0.5, %v1613_v12  ;;  %v2446_v1 = vmov 6   ;;  %v1698_v10 = vadd.s32 8, %v1697_v9 }
 0xa5b   :  { %v1634_v16 = vsel %vm1632_vm7, %v1633_v13, %v1631_v14  ;;  %v1700_v12 = vand.u32 127, %v902_v39  ;;  %vm1708_vm6 = vcmask 74752   ;;  %v1569_v39 = vld [vmem:[%s2949_s24 + $0x18] sm:$0xff] }
 0xa5c   :  { %v1636_v17 = vmax.f32 %v1634_v16, 1e-08  ;;  %v1615_v18 = vsub.f32 1.5, %v1614_v15  ;;  %1589 = vmatpush.msrb.mxu3 %v1569_v39 }
 0xa5d   :  { %vm1702_vm4 = vcmp.eq.s32.totalorder %v1698_v10, %v1700_v12  ;;  %vm1701_vm5 = vcmp.eq.s32.totalorder %v1697_v9, %v1700_v12 }
 0xa5e   :  { %1944 = vrcp.f32 %v1636_v17  ;;  %v1616_v19 = vmul.f32 %v1943_v8, %v1615_v18  ;;  %v2882_v21 = vpop.f32.mrf.mxu3  ;;  %v1662_v31 = vand.u32 2147483648, %v1636_v17  ;;  %v1660_v33 = vand.u32 2147483647, %v1636_v17 }
 0xa5f   :  { %v1241_v22 = vsel %vm1240_vm8, %v2882_v21, -inf  ;;  %vm1656_vm12 = vweird.f32 %v1636_v17 }
 0xa60   :  { %v1617_v23 = vmul.f32 %v1616_v19, %v1606_v4  ;;  %1242 = vmax.xlane.f32.xlu1 %v1241_v22  ;;  %v1663_v36 = vor.u32 1.1754944e-38, %v1662_v31  ;;  %vm1661_vm14 = vcmp.eq.f32.partialorder %v1660_v33, 8.507059e+37 }
 0xa62   :  { %v1619_v25 = vsel %vm1618_vm9, %v1606_v4, %v1617_v23  ;;  %v1368_v4 = vpop.f32.mrf.mxu0 }
 0xa63   :  { %v1622_v26 = vsel %vm1620_vm10, %v1621_v24, %v1619_v25  ;;  %vm1600_vm10 = vcmask 7168  }
 0xa64   :  { %v1945_v27 = vpop.eup %1944  ;;  %v1635_v28 = vmax.f32 %v1622_v26, 1e-08 }
 0xa65   :  { %v1652_v29 = vmul.f32 %v1945_v27, %v1636_v17  ;;  %vm1657_vm11 = vweird.f32 %v1945_v27 }
 0xa66   :  { %1946 = vrcp.f32 %v1635_v28  ;;  %vm1658_vm13 = vmor %vm1656_vm12, %vm1657_vm11  ;;  %v1648_v43 = vand.u32 2147483648, %v1635_v28  ;;  %v1646_v45 = vand.u32 2147483647, %v1635_v28  ;;  %vm1642_vm0 = vweird.f32 %v1635_v28 }
 0xa67   :  { %v1653_v30 = vsub.f32 1.0, %v1652_v29 }
 0xa68   :  { %v1649_v47 = vor.u32 1.1754944e-38, %v1648_v43  ;;  %vm1647_vm3 = vcmp.eq.f32.partialorder %v1646_v45, 8.507059e+37 }
 0xa69   :  { %v1654_v32 = vmul.f32 %v1945_v27, %v1653_v30  ;;  %v1566_v30 = vld [vmem:[%s2949_s24] sm:$0xff] }
 0xa6a   :  { %v1488_v6 = vpop.f32.mrf.mxu0 }
 0xa6b   :  { %v1655_v34 = vadd.f32 %v1945_v27, %v1654_v32  ;;  %v1308_v32 = vpop.f32.mrf.mxu1 }
 0xa6c   :  { %v1947_v35 = vpop.eup %1946 }
 0xa6d   :  { %v1659_v37 = vsel %vm1658_vm13, %v1945_v27, %v1655_v34  ;;  %v1638_v38 = vmul.f32 %v1947_v35, %v1635_v28  ;;  %vm1643_vm15 = vweird.f32 %v1947_v35  ;;  %v1567_v28 = vld [vmem:[%s2949_s24 + $0x8] sm:$0xff] }
 0xa6e   :  { %v1664_v40 = vsel %vm1661_vm14, %v1663_v36, %v1659_v37  ;;  %vm1644_vm1 = vmor %vm1642_vm0, %vm1643_vm15 }
 0xa6f   :  { %v1666_v41 = vmul.f32 %v1664_v40, %v2862_v51  ;;  %v1639_v42 = vsub.f32 1.0, %v1638_v38  ;;  %v1428_v38 = vpop.f32.mrf.mxu2 }
 0xa71   :  { %1840 = vmatpush.xpose.msk.msra.mxu0 %vm359_vm2, %v1666_v41  ;;  %v1640_v44 = vmul.f32 %v1947_v35, %v1639_v42 }
 0xa73   :  { %v1641_v46 = vadd.f32 %v1947_v35, %v1640_v44  ;;  %v1398_v37 = vpop.f32.mrf.mxu1 }
 0xa75   :  { %v1645_v20 = vsel %vm1644_vm1, %v1947_v35, %v1641_v46  ;;  %v1338_v35 = vpop.f32.mrf.mxu3 }
 0xa76   :  { %v1650_v48 = vsel %vm1647_vm3, %v1649_v47, %v1645_v20 }
 0xa77   :  { %v1665_v49 = vmul.f32 %v1650_v48, %v2869_v55  ;;  %v2442_v55 = vmov 0  }
 0xa78   :  { %1894 = vset.pattern.permute.xlu0 %v2442_v55  ;;  %v1548_v55 = vpop.f32.mrf.mxu2 }
 0xa79   :  { %1841 = vmatpush.xpose.msk.msra.mxu0 %vm359_vm2, %v1665_v49 }
 0xa7c   :  { %1842 = vmatmul.msk.f32.vlgmr.msra.gmra.mxu0 %vm359_vm2, %v1665_v49 }
 0xa7d   :  { %v1458_v46 = vpop.f32.mrf.mxu3 }
 0xa84   :  { %1843 = vmatmul.msk.f32.gmra.mxu0 %vm359_vm2, %v1666_v41 }
 0xad3   :  { %v1243_v50 = vpop.xlane.xlu1 %1242 }
 0xad4   :  { %v1244_v51 = vsub.f32 %v2882_v21, %v1243_v50 }
 0xad6   :  { %v1245_v52 = vmul.f32 1.442695, %v1244_v51 }
 0xad8   :  { %1948 = vpow2.f32 %v1245_v52 }
 0xade   :  { %v1949_v53 = vpop.eup %1948 }
 0xadf   :  { %v1247_v54 = vsel %vm1240_vm8, %v1949_v53, 0.0 }
 0xae0   :  { %1248 = vadd.xlane.f32.xlu2 %v1247_v54  ;;  %v1518_v54 = vpop.f32.mrf.mxu1 }
 0xaf9   :  { %v1690_v7 = vpop.f32.mrf.mxu0 }
 0xafa   :  { %v1703_v17 = vsel %vm1701_vm5, 0.0, %v1690_v7 }
 0xafb   :  { %v1705_v19 = vand.u32 2147483647, %v1703_v17 }
 0xafd   :  { %v1707_v25 = vsel %vm1240_vm8, %v1705_v19, 0.0 }
 0xb01   :  { %v1693_v13 = vpop.f32.mrf.mxu0 }
 0xb02   :  { %v1704_v15 = vsel %vm1702_vm4, 0.0, %v1693_v13 }
 0xb03   :  { %v1706_v18 = vand.u32 2147483647, %v1704_v15 }
 0xb05   :  { %v1709_v23 = vsel %vm1708_vm6, %v1706_v18, 0.0 }
 0xb06   :  { %v1710_v26 = vadd.f32 %v1709_v23, %v1707_v25 }
 0xb53   :  { %v1249_v58 = vpop.xlane.xlu2 %1248 }
 0xb54   :  { %1950 = vrcp.f32 %v1249_v58 }
 0xb55   :  { %1952 = vlog2.f32 %v1249_v58 }
 0xb5a   :  { %v1951_v59 = vpop.eup %1950 }
 0xb5b   :  { %v1251_v60 = vmul.f32 %v1951_v59, %v1949_v53  ;;  %v1953_v8 = vpop.eup %1952 }
 0xb5c   :  { %v1253_v11 = vmul.f32 0.6931472, %v1953_v8 }
 0xb5d   :  { %1342 = vperm.xlu2 %1896, %v1251_v60   ;;  %1312 = vperm.xlu1 %1895, %v1251_v60  }
 0xb5e   :  { %1282 = vperm.xlu0 %1894, %v1251_v60   ;;  %v1254_v14 = vadd.f32 %v1253_v11, %v1243_v50 }
 0xb60   :  { %v1255_v16 = vsub.f32 %v2882_v21, %v1254_v14  ;;  %v1568_v21 = vld [vmem:[%s2949_s24 + $0x10] sm:$0xff]  ;;  %s2450_s24 = smov [#allocation32]  }
 0xb61   :  { %1590 = vmatpush.msrb.mxu3 %v1568_v21  ;;  %s1761_s25 = sshll.u32 %s2450_s24, 4  ;;  %s1762_s25 = int_to_ptr.vmem [resolvable:$true] %s1761_s25 }
 0xb62   :  { %v1729_v22 = vsub.f32 -2.3025851, %v1255_v16 }
 0xb63   :  { %1591 = vmatpush.msrb.mxu3 %v1567_v28 }
 0xb64   :  { %v1730_v24 = vsel %vm1240_vm8, %v1729_v22, 0.0  ;;  %vm1752_vm8 = vcmask 0  }
 0xb65   :  { %1898 = vset.pattern.permute.xlu2 %v2443_v61  ;;  %1897 = vset.pattern.permute.xlu1 %v2444_v62 }
 0xb66   :  { %1901 = vset.pattern.permute.xlu0 %v2445_v63  ;;  %1402 = vperm.xlu2 %1898, %v1251_v60  }
 0xb67   :  { %1372 = vperm.xlu1 %1897, %v1251_v60   ;;  %1492 = vperm.xlu0 %1901, %v1251_v60  }
 0xb68   :  { %1592 = vmatpush.msrb.mxu3 %v1566_v30  ;;  %v1917_v30 = vld [vmem:[#allocation5] ss:$0 sm:$0xff] }
 0xb6e   :  { %1900 = vset.pattern.permute.xlu2 %v2446_v1 }
 0xb6f   :  { %1899 = vset.pattern.permute.xlu1 %v2447_v2  ;;  %1462 = vperm.xlu2 %1900, %v1251_v60   ;;  %v2452_v2 = vmov 8.0  }
 0xb70   :  { %1432 = vperm.xlu1 %1899, %v1251_v60   ;;  %1904 = vset.pattern.permute.xlu0 %v2448_v3 }
 0xb77   :  { %1903 = vset.pattern.permute.xlu2 %v2448_v3 }
 0xb78   :  { %1902 = vset.pattern.permute.xlu1 %v2449_v5  ;;  %1552 = vperm.xlu2 %1903, %v1251_v60  }
 0xb79   :  { %1522 = vperm.xlu1 %1902, %v1251_v60  }
 0xba1   :  { %1731 = vadd.xlane.f32.xlu2 %v1730_v24 }
 0xba3   :  { %1711 = vadd.xlane.f32.xlu1 %v1710_v26 }
 0xbb7   :  { %v1343_v27 = vpop.permute.xlu2 %1342 }
 0xbb8   :  { %v1345_v47 = vmul.f32 %v1343_v27, %v1338_v35 }
 0xbc0   :  { %v1403_v31 = vpop.permute.xlu2 %1402 }
 0xbc1   :  { %v1405_v43 = vmul.f32 %v1403_v31, %v1398_v37 }
 0xbc9   :  { %v1463_v36 = vpop.permute.xlu2 %1462 }
 0xbca   :  { %v1465_v20 = vmul.f32 %v1463_v36, %v1458_v46 }
 0xbcf   :  { %v1313_v29 = vpop.permute.xlu1 %1312 }
 0xbd0   :  { %v1283_v33 = vpop.permute.xlu0 %1282  ;;  %v1315_v48 = vmul.f32 %v1313_v29, %v1308_v32 }
 0xbd1   :  { %v1285_v49 = vmul.f32 %v1283_v33, %v2894_v0  ;;  %v2451_v0 = vmov 100.0  }
 0xbd2   :  { %v1553_v53 = vpop.permute.xlu2 %1552  ;;  %1954 = vrcp.f32 %v2451_v0 }
 0xbd3   :  { %v1556_v56 = vadd.f32 %v1315_v48, %v1285_v49  ;;  %v1555_v59 = vmul.f32 %v1553_v53, %v1548_v55  ;;  %1956 = vrcp.f32 %v2452_v2 }
 0xbd8   :  { %v1955_v3 = vpop.eup %1954 }
 0xbd9   :  { %v1373_v34 = vpop.permute.xlu1 %1372  ;;  %v1493_v40 = vpop.permute.xlu0 %1492  ;;  %v1721_v5 = vmul.f32 100.0, %v1955_v3 }
 0xbda   :  { %v1375_v44 = vmul.f32 %v1373_v34, %v1368_v4  ;;  %v1495_v45 = vmul.f32 %v1493_v40, %v1488_v6  ;;  %v1957_v4 = vpop.eup %1956 }
 0xbdb   :  { %v1742_v6 = vmul.f32 8.0, %v1957_v4  ;;  %v1722_v9 = vsub.f32 1.0, %v1721_v5  ;;  %vm1746_vm7 = vweird.f32 %v1957_v4 }
 0xbdc   :  { %v1557_v51 = vadd.f32 %v1375_v44, %v1345_v47  ;;  %v1559_v52 = vadd.f32 %v1495_v45, %v1465_v20 }
 0xbdd   :  { %v1743_v13 = vsub.f32 1.0, %v1742_v6  ;;  %v1723_v16 = vmul.f32 %v1955_v3, %v1722_v9 }
 0xbde   :  { %v1561_v60 = vadd.f32 %v1557_v51, %v1556_v56 }
 0xbdf   :  { %v1744_v19 = vmul.f32 %v1957_v4, %v1743_v13  ;;  %v1724_v23 = vadd.f32 %v1955_v3, %v1723_v16 }
 0xbe1   :  { %v1745_v26 = vadd.f32 %v1957_v4, %v1744_v19 }
 0xbe2   :  { %v1433_v41 = vpop.permute.xlu1 %1432 }
 0xbe3   :  { %v1435_v42 = vmul.f32 %v1433_v41, %v1428_v38  ;;  %v1747_v28 = vsel %vm1746_vm7, %v1957_v4, %v1745_v26 }
 0xbe5   :  { %v1558_v50 = vadd.f32 %v1435_v42, %v1405_v43 }
 0xbe7   :  { %v1562_v57 = vadd.f32 %v1559_v52, %v1558_v50 }
 0xbe9   :  { %v1563_v63 = vadd.f32 %v1562_v57, %v1561_v60 }
 0xbeb   :  { %v1523_v58 = vpop.permute.xlu1 %1522 }
 0xbec   :  { %v1525_v61 = vmul.f32 %v1523_v58, %v1518_v54 }
 0xbee   :  { %v1560_v62 = vadd.f32 %v1555_v59, %v1525_v61 }
 0xbf0   :  { %v1564_v1 = vadd.f32 %v1563_v63, %v1560_v62 }
 0xbf2   :  { %1565 = vst.msk [vmem:[#allocation32] sm:$0xff] %vm359_vm2, %v1564_v1  ;;  %1839 = vmatmul.msk.f32.vlgmr.msrb.gmra.mxu3 %vm359_vm2, %v1564_v1  ;;  %vm1725_vm2 = vweird.f32 %v1955_v3 }
 0xbf3   :  { %1766 = dma.vmem_to_hbm [thread:$0]  %s1762_s25, 128, %s1764_s7, [#allocation8]   ;;  %v1726_v27 = vsel %vm1725_vm2, %v1955_v3, %v1724_v23 }
 0xc14   :  { %v1732_v7 = vpop.xlane.xlu2 %1731 }
 0xc15   :  { %v1733_v8 = vrot.slane %v1732_v7, 4 }
 0xc16   :  { %v1712_v10 = vpop.xlane.xlu1 %1711 }
 0xc17   :  { %v1734_v11 = vadd.f32 %v1733_v8, %v1732_v7  ;;  %v1713_v12 = vrot.slane %v1712_v10, 4 }
 0xc19   :  { %v1735_v14 = vrot.slane %v1734_v11, 2  ;;  %v1714_v15 = vadd.f32 %v1713_v12, %v1712_v10 }
 0xc1b   :  { %v1736_v17 = vadd.f32 %v1735_v14, %v1734_v11  ;;  %v1715_v18 = vrot.slane %v1714_v15, 2 }
 0xc1d   :  { %v1716_v22 = vadd.f32 %v1715_v18, %v1714_v15  ;;  %v1737_v24 = vrot.slane %v1736_v17, 1 }
 0xc1f   :  { %v1717_v25 = vrot.slane %v1716_v22, 1  ;;  %v1738_v21 = vadd.f32 %v1737_v24, %v1736_v17 }
 0xc21   :  { %v1718_v39 = vadd.f32 %v1717_v25, %v1716_v22 }
 0xc23   :  { %1844 = vpush %v1718_v39 }
 0xc24   :  { %1846 = vpush %v1726_v27 }
 0xc25   :  { %1848 = vpush %v1738_v21 }
 0xc26   :  { %1850 = vpush %v1747_v28 }
 0xc54   :  { %s1845_s27 = spop %1844 }
 0xc55   :  { %s1847_s2 = spop %1846 }
 0xc56   :  { %s1849_s20 = spop %1848  ;;  %s1728_s22 = smul.f32 %s1847_s2, %s1845_s27 }
 0xc57   :  { %s1740_s12 = smul.f32 0.1, %s1849_s20  ;;  %s1851_s1 = spop %1850 }
 0xc59   :  { %s1749_s21 = smul.f32 %s1851_s1, %s1740_s12 }
 0xc5b   :  { %s1750_s8 = sadd.f32 %s1749_s21, %s1728_s22 }
 0xc5d   :  { %v1751_v29 = vstv %s1750_s8 }
 0xc5e   :  { %1753 = vst.msk [vmem:[#allocation33] sm:$0x1] %vm1752_vm8, %v1751_v29 }
 0xc5f   :  { %1777 = dma.vmem_to_hbm [thread:$0]  %s1773_s11, 16, %s1775_s26, [#allocation34]  }
 0xc75   :  { %v1594_v31 = vpop.f32.mrf.mxu3 }
 0xc76   :  { %v1595_v32 = vadd.f32 %v1917_v30, %v1594_v31 }
 0xc78   :  { %vm1597_vm9 = vcmp.gt.f32.partialorder %v1595_v32, 0.0  ;;  %v1598_v33 = vmul.f32 0.01, %v1595_v32 }
 0xc7a   :  { %v1599_v34 = vsel %vm1597_vm9, %v1595_v32, %v1598_v33 }
 0xc7b   :  { %1601 = vst.msk [vmem:[%s2989_s9] sm:$0xff] %vm1600_vm10, %v1599_v34 }
 0xc7c   :  { %2408 = dma.done.wait [#allocation8], 128  }
 0xc7d   :  { %2409 = vsyncadd [#allocation8], 4294967168 }
 0xc7e   :  { %2410 = dma.done.wait [#allocation34], 16  }
 0xc7f   :  { %2411 = vsyncadd [#allocation34], 4294967280 }
 0xc80   :  { %1788 = vsyncpa [#allocation7], 1 }
 0xc81   :  { %1789 = vsyncpa [#allocation10], 1 }
 0xc82   :  { %1790 = vsyncpa [#allocation13], 1 }
 0xc83   :  { %1791 = vsyncpa [#allocation16], 1 }
 0xc84   :  { %1792 = vsyncpa [#allocation19], 1 }
 0xc85   :  { %1793 = vsyncpa [#allocation22], 1 }
 0xc86   :  { %1794 = vsyncpa [#allocation25], 1 }
 0xc87   :  { %1795 = vsyncpa [#allocation28], 1 }
 0xc88   :  { %1796 = vsyncpa [#allocation31], 1 }
 0xc89   :  { %1797 = vsyncpa [#allocation8], 1 }
 0xc8a   :  { %1798 = vsyncpa [#allocation34], 1 }

</bundles_post_ra>
